<compile_context>
chip_gen: v7x
topology: tpu7x:2x2x1
jax: 0.10.0
libtpu: 0.0.40
codegen_flags: <defaults>
</compile_context>

<pallas_src>
import functools
import math

import jax
import jax.numpy as jnp
from jax.experimental import pallas as pl
from jax.experimental.pallas import tpu as pltpu


# ---------------------------------------------------------------------------
# Fused kernel: conv (+folded BN scale) -> +shift -> ReLU -> maxpool 2x2 -> FC
# ---------------------------------------------------------------------------
def _fused_cnn_kernel(x_ref, wslab_ref, shift_ref, wfc_ref, bfc_ref, o_ref, *,
                      NB, Cin, K, Ho, Hp, Cout):
    # ---- conv LHS: concat the Cin*K row-shifted slices of each image along the
    #      contraction axis -> (NB*Ho, Cin*K*W).  One well-shaped MXU matmul.
    img_rows = []
    for n in range(NB):
        blocks = [x_ref[n, ci, ki:ki + Ho, :]
                  for ci in range(Cin) for ki in range(K)]
        img_rows.append(blocks[0] if len(blocks) == 1
                        else jnp.concatenate(blocks, axis=1))
    lhs = img_rows[0] if NB == 1 else jnp.concatenate(img_rows, axis=0)
    lhs = lhs.astype(wslab_ref.dtype)          # bf16 on v6e/v7x, f32 otherwise

    # ---- conv (+folded BN scale), f32 accumulation --------------------------
    conv = jnp.dot(lhs, wslab_ref[...], preferred_element_type=jnp.float32)
    # BN(eval) shift (conv bias folded in) + ReLU; f32, lane-dense (512 lanes)
    conv = jnp.maximum(conv + shift_ref[...], 0.0)            # (NB*Ho, Wo_pad*Cout)

    # ---- MaxPool2d(2, 2) -----------------------------------------------------
    R = NB * Ho
    # vertical pair max: row r holds max(conv[r], conv[r+1]); only even rows
    # within each image are consumed below, so image boundaries never mix.
    v = jnp.maximum(conv[0:R - 1, :], conv[1:R, :])           # (R-1, Wo_pad*Cout)
    # horizontal pair max via a Cout-lane rotation; wraparound lands only in the
    # padded (zero-FC-weight) wo columns, keeping the array 512-lane dense.
    vs = jnp.concatenate([v[:, Cout:], v[:, :Cout]], axis=1)
    h = jnp.maximum(v, vs)                                     # (R-1, Wo_pad*Cout)

    # ---- FC: gather the Hp even pooled rows of each image onto the lane axis
    #      -> (NB, Hp*Wo_pad*Cout), then ONE matmul against the permuted FC slab.
    fc_rows = []
    for n in range(NB):
        rb = [h[n * Ho + 2 * hp:n * Ho + 2 * hp + 1, :] for hp in range(Hp)]
        fc_rows.append(rb[0] if Hp == 1 else jnp.concatenate(rb, axis=1))
    fc_in = fc_rows[0] if NB == 1 else jnp.concatenate(fc_rows, axis=0)
    fc_in = fc_in.astype(wfc_ref.dtype)

    logits = jnp.dot(fc_in, wfc_ref[...], preferred_element_type=jnp.float32)
    o_ref[...] = (logits + bfc_ref[...]).astype(o_ref.dtype)


# ---------------------------------------------------------------------------
# One-time parameter transforms (weight-only; no activation traffic)
# ---------------------------------------------------------------------------
def precompute_fused_params(params, x_shape, weights_dtype=jnp.float32):
    w_conv = params["w_conv"]        # (Cout, Cin, K, K)
    b_conv = params["b_conv"]        # (Cout,)
    bn_scale = params["bn_scale"]    # gamma / sqrt(var + eps)
    bn_shift = params["bn_shift"]    # beta - mean * bn_scale
    w_fc = params["w_fc"]            # (Cout*Hp*Wp, ncls), NCHW-flatten rows
    b_fc = params["b_fc"]            # (ncls,)

    N, Cin, H, W = x_shape
    Cout, _, K, _ = w_conv.shape
    Ho, Wo = H - K + 1, W - K + 1
    Hp, Wp = Ho // 2, Wo // 2
    ncls = w_fc.shape[1]

    # pad the (wo, c) lane axis so Wo_pad*Cout is a multiple of 128 (lane-dense)
    lane_step = 128 // math.gcd(Cout, 128)
    Wo_pad = ((Wo + lane_step - 1) // lane_step) * lane_step
    L = Wo_pad * Cout

    # fold BN scale into the conv weights; conv bias + BN shift into one shift
    scale = bn_scale
    shift = bn_shift + b_conv * bn_scale

    # Banded-Toeplitz conv slab, flattened to ONE (Cin*K*W, Wo_pad*Cout) RHS:
    #   wslab[(ci*K+ki)*W + w, wo*Cout + co] = w_conv[co,ci,ki,w-wo]*scale[co]
    #   if 0 <= w-wo < K and wo < Wo, else 0.
    wk = (w_conv * scale[:, None, None, None]).transpose(1, 2, 3, 0)   # (Cin,K,K,Cout)
    w_idx = jnp.arange(W)
    wo_idx = jnp.arange(Wo_pad)
    kj = w_idx[None, :] - wo_idx[:, None]                              # (Wo_pad, W)
    valid = ((kj >= 0) & (kj < K) & (wo_idx[:, None] < Wo)).astype(wk.dtype)
    ws = wk[:, :, jnp.clip(kj, 0, K - 1), :]                           # (Cin,K,Wo_pad,W,Cout)
    ws = ws * valid[None, None, :, :, None]
    wslab = ws.transpose(0, 1, 3, 2, 4).reshape(Cin * K * W, L)

    # per-(wo, c) shift; zero on padded wo columns so they stay zero post-ReLU
    shift_row = jnp.where(wo_idx[:, None] < Wo, shift[None, :], 0.0).reshape(1, L)

    # FC weights in the kernel's pooled layout: rows = (hp, wo_pad, c); odd-wo
    # and padded-wo rows are zero (absorbing the horizontal pool decimation).
    w4 = w_fc.reshape(Cout, Hp, Wp, ncls).transpose(1, 2, 0, 3)        # (Hp,Wp,Cout,ncls)
    wfc = jnp.zeros((Hp, Wo_pad, Cout, ncls), w_fc.dtype)
    wfc = wfc.at[:, 0:2 * Wp:2].set(w4)
    wfc = wfc.reshape(Hp * L, ncls)

    bfc_row = b_fc.reshape(1, ncls)

    dims = dict(N=N, Cin=Cin, K=K, H=H, W=W, Ho=Ho, Wo=Wo, Wo_pad=Wo_pad,
                Hp=Hp, Wp=Wp, Cout=Cout, ncls=ncls)
    return dict(wslab=wslab.astype(weights_dtype),
                shift_row=shift_row.astype(jnp.float32),
                wfc=wfc.astype(weights_dtype),
                bfc=bfc_row.astype(jnp.float32),
                dims=dims)


def cnn_classifier_forward(x, fused, *, batch_block=None):
    """x: (N, Cin, H, W) float32.  Returns logits (N, num_classes) float32."""
    d = fused["dims"]
    N, Cin, K, H, W = d["N"], d["Cin"], d["K"], d["H"], d["W"]
    Ho, Hp, Cout, ncls = d["Ho"], d["Hp"], d["Cout"], d["ncls"]

    # Batch grid (useful on v7x's 2 TCs once N is large); a single step at toy N.
    NB = N if batch_block is None else batch_block
    assert N % NB == 0 and (NB == N or NB % 8 == 0), "batch block must tile N cleanly"

    wslab, shift_row = fused["wslab"], fused["shift_row"]
    wfc, bfc = fused["wfc"], fused["bfc"]

    kernel = functools.partial(_fused_cnn_kernel, NB=NB, Cin=Cin, K=K, Ho=Ho,
                               Hp=Hp, Cout=Cout)

    in_specs = [
        pl.BlockSpec((NB, Cin, H, W), lambda i: (i, 0, 0, 0)),
        pl.BlockSpec(wslab.shape, lambda i: (0, 0)),      # VMEM-resident weights
        pl.BlockSpec(shift_row.shape, lambda i: (0, 0)),
        pl.BlockSpec(wfc.shape, lambda i: (0, 0)),
        pl.BlockSpec(bfc.shape, lambda i: (0, 0)),
    ]
    out_specs = pl.BlockSpec((NB, ncls), lambda i: (i, 0))

    L = wslab.shape[1]
    cost = pl.CostEstimate(
        flops=2 * N * (Ho * (Cin * K * W) * L + Hp * L * ncls),
        transcendentals=0,
        bytes_accessed=int(x.size * x.dtype.itemsize
                           + sum(a.size * a.dtype.itemsize
                                 for a in (wslab, shift_row, wfc, bfc))
                           + N * ncls * 4),
    )

    return pl.pallas_call(
        kernel,
        out_shape=jax.ShapeDtypeStruct((N, ncls), jnp.float32),
        grid=(N // NB,),
        in_specs=in_specs,
        out_specs=out_specs,
        compiler_params=pltpu.CompilerParams(dimension_semantics=("parallel",)),
        cost_estimate=cost,
    )(x, wslab, shift_row, wfc, bfc)


# ---------------------------------------------------------------------------
# Pure-JAX reference (correctness check only)
# ---------------------------------------------------------------------------
def reference_forward(x, params):
    w_conv, b_conv = params["w_conv"], params["b_conv"]
    bn_scale, bn_shift = params["bn_scale"], params["bn_shift"]
    w_fc, b_fc = params["w_fc"], params["b_fc"]

    y = jax.lax.conv_general_dilated(
        x, w_conv, window_strides=(1, 1), padding="VALID",
        dimension_numbers=("NCHW", "OIHW", "NCHW"),
    ) + b_conv[None, :, None, None]
    y = y * bn_scale[None, :, None, None] + bn_shift[None, :, None, None]
    y = jnp.maximum(y, 0.0)
    N, C, Ho, Wo = y.shape
    Hp, Wp = Ho // 2, Wo // 2
    y = y[:, :, : 2 * Hp, : 2 * Wp].reshape(N, C, Hp, 2, Wp, 2).max(axis=(3, 5))
    return y.reshape(N, -1) @ w_fc + b_fc


if __name__ == "__main__":
    # small shapes consistent with the module (in_channels=1 default)
    N, Cin, H, W = 2, 1, 16, 16
    hidden_dim, k, num_classes = 32, 3, 10
    Ho, Wo = H - k + 1, W - k + 1          # 14, 14
    Hp, Wp = Ho // 2, Wo // 2              # 7, 7
    F = hidden_dim * Hp * Wp               # 1568

    key = jax.random.PRNGKey(0)
    ks = jax.random.split(key, 8)

    w_conv = jax.random.normal(ks[0], (hidden_dim, Cin, k, k), jnp.float32) * 0.1
    b_conv = jax.random.normal(ks[1], (hidden_dim,), jnp.float32) * 0.1
    gamma = 1.0 + 0.1 * jax.random.normal(ks[2], (hidden_dim,), jnp.float32)
    beta = 0.1 * jax.random.normal(ks[3], (hidden_dim,), jnp.float32)
    run_mean = 0.05 * jax.random.normal(ks[4], (hidden_dim,), jnp.float32)
    run_var = 1.0 + 0.1 * jnp.abs(jax.random.normal(ks[5], (hidden_dim,), jnp.float32))
    eps = 1e-5
    bn_scale = gamma / jnp.sqrt(run_var + eps)
    bn_shift = beta - run_mean * bn_scale
    w_fc = jax.random.normal(ks[6], (F, num_classes), jnp.float32) * 0.02
    b_fc = jax.random.normal(ks[7], (num_classes,), jnp.float32) * 0.02

    params = dict(w_conv=w_conv, b_conv=b_conv, bn_scale=bn_scale,
                  bn_shift=bn_shift, w_fc=w_fc, b_fc=b_fc)

    x = jax.random.normal(key, (N, Cin, H, W), jnp.float32)
    ref = jax.block_until_ready(reference_forward(x, params))

    # f32 weights: exact path, checked tightly against the f32 reference.
    fused_f32 = precompute_fused_params(params, x.shape, weights_dtype=jnp.float32)
    out_f32 = jax.block_until_ready(cnn_classifier_forward(x, fused_f32))
    assert out_f32.shape == (N, num_classes)
    assert jnp.allclose(out_f32, ref, atol=1e-3, rtol=1e-3), "f32 kernel mismatch"

    # bf16 weights / bf16 MXU inputs (v6e/v7x optimization); f32 accumulation and
    # epilogue, so only the cast error remains -> looser tolerance.
    fused_bf16 = precompute_fused_params(params, x.shape, weights_dtype=jnp.bfloat16)
    out_bf16 = jax.block_until_ready(cnn_classifier_forward(x, fused_bf16))
    assert out_bf16.shape == (N, num_classes)
    assert jnp.allclose(out_bf16, ref, atol=5e-2, rtol=5e-2), "bf16 kernel mismatch"

    print("KERNEL_OK")
</pallas_src>

<mosaic_0001>
module attributes {stable_mosaic.version = 11 : i64} {
  func.func @_fused_cnn_kernel(%arg0: i32, %arg1: memref<2x1x16x16xf32, #tpu.memory_space<vmem>>, %arg2: memref<48x512xf32, #tpu.memory_space<vmem>>, %arg3: memref<1x512xf32, #tpu.memory_space<vmem>>, %arg4: memref<3584x10xf32, #tpu.memory_space<vmem>>, %arg5: memref<1x10xf32, #tpu.memory_space<vmem>>, %arg6: memref<2x10xf32, #tpu.memory_space<vmem>>) attributes {dimension_semantics = [#tpu.dimension_semantics<parallel>], iteration_bounds = array<i64: 1>, scalar_prefetch = 0 : i64, scratch_operands = 0 : i64, tpu.core_type = #tpu.core_type<tc>, window_params = [{transform_indices = @transform_0, window_bounds = array<i64: 2, 1, 16, 16>}, {pipeline_mode = #tpu.pipeline_mode<synchronous>, transform_indices = @transform_1, window_bounds = array<i64: 48, 512>}, {pipeline_mode = #tpu.pipeline_mode<synchronous>, transform_indices = @transform_2, window_bounds = array<i64: 1, 512>}, {pipeline_mode = #tpu.pipeline_mode<synchronous>, transform_indices = @transform_3, window_bounds = array<i64: 3584, 10>}, {pipeline_mode = #tpu.pipeline_mode<synchronous>, transform_indices = @transform_4, window_bounds = array<i64: 1, 10>}, {transform_indices = @transform_5, window_bounds = array<i64: 2, 10>}]} {
    %c0 = arith.constant 0 : index
    %c0_0 = arith.constant 0 : index
    %c0_1 = arith.constant 0 : index
    %c0_2 = arith.constant 0 : index
    %0 = vector.load %arg1[%c0, %c0_0, %c0_1, %c0_2] : memref<2x1x16x16xf32, #tpu.memory_space<vmem>>, vector<1x1x14x16xf32>
    %1 = vector.shape_cast %0 : vector<1x1x14x16xf32> to vector<14x16xf32>
    %c0_3 = arith.constant 0 : index
    %c0_4 = arith.constant 0 : index
    %c1 = arith.constant 1 : index
    %c0_5 = arith.constant 0 : index
    %2 = vector.load %arg1[%c0_3, %c0_4, %c1, %c0_5] : memref<2x1x16x16xf32, #tpu.memory_space<vmem>>, vector<1x1x14x16xf32>
    %3 = vector.shape_cast %2 : vector<1x1x14x16xf32> to vector<14x16xf32>
    %c0_6 = arith.constant 0 : index
    %c0_7 = arith.constant 0 : index
    %c2 = arith.constant 2 : index
    %c0_8 = arith.constant 0 : index
    %4 = vector.load %arg1[%c0_6, %c0_7, %c2, %c0_8] : memref<2x1x16x16xf32, #tpu.memory_space<vmem>>, vector<1x1x14x16xf32>
    %5 = vector.shape_cast %4 : vector<1x1x14x16xf32> to vector<14x16xf32>
    %6 = tpu.concatenate %1, %3, %5 in 1 : vector<14x16xf32>, vector<14x16xf32>, vector<14x16xf32> -> vector<14x48xf32>
    %c1_9 = arith.constant 1 : index
    %c0_10 = arith.constant 0 : index
    %c0_11 = arith.constant 0 : index
    %c0_12 = arith.constant 0 : index
    %7 = vector.load %arg1[%c1_9, %c0_10, %c0_11, %c0_12] : memref<2x1x16x16xf32, #tpu.memory_space<vmem>>, vector<1x1x14x16xf32>
    %8 = vector.shape_cast %7 : vector<1x1x14x16xf32> to vector<14x16xf32>
    %c1_13 = arith.constant 1 : index
    %c0_14 = arith.constant 0 : index
    %c1_15 = arith.constant 1 : index
    %c0_16 = arith.constant 0 : index
    %9 = vector.load %arg1[%c1_13, %c0_14, %c1_15, %c0_16] : memref<2x1x16x16xf32, #tpu.memory_space<vmem>>, vector<1x1x14x16xf32>
    %10 = vector.shape_cast %9 : vector<1x1x14x16xf32> to vector<14x16xf32>
    %c1_17 = arith.constant 1 : index
    %c0_18 = arith.constant 0 : index
    %c2_19 = arith.constant 2 : index
    %c0_20 = arith.constant 0 : index
    %11 = vector.load %arg1[%c1_17, %c0_18, %c2_19, %c0_20] : memref<2x1x16x16xf32, #tpu.memory_space<vmem>>, vector<1x1x14x16xf32>
    %12 = vector.shape_cast %11 : vector<1x1x14x16xf32> to vector<14x16xf32>
    %13 = tpu.concatenate %8, %10, %12 in 1 : vector<14x16xf32>, vector<14x16xf32>, vector<14x16xf32> -> vector<14x48xf32>
    %14 = tpu.concatenate %6, %13 in 0 : vector<14x48xf32>, vector<14x48xf32> -> vector<28x48xf32>
    %c0_21 = arith.constant 0 : index
    %c0_22 = arith.constant 0 : index
    %15 = vector.load %arg2[%c0_21, %c0_22] : memref<48x512xf32, #tpu.memory_space<vmem>>, vector<48x512xf32>
    %cst = arith.constant dense<0.000000e+00> : vector<28x512xf32>
    %16 = tpu.matmul %14, %15, %cst {dimension_numbers = #tpu.dot_dimension_numbers<[1], [0], [0], [1], [0, 0, 1, 1], [], []>} : vector<28x48xf32>, vector<48x512xf32>, vector<28x512xf32> -> vector<28x512xf32>
    %c0_23 = arith.constant 0 : index
    %c0_24 = arith.constant 0 : index
    %17 = vector.load %arg3[%c0_23, %c0_24] : memref<1x512xf32, #tpu.memory_space<vmem>>, vector<1x512xf32>
    %18 = vector.broadcast %17 : vector<1x512xf32> to vector<28x512xf32>
    %19 = arith.addf %16, %18 : vector<28x512xf32>
    %cst_25 = arith.constant 0.000000e+00 : f32
    %20 = vector.broadcast %cst_25 : f32 to vector<28x512xf32>
    %21 = arith.maximumf %19, %20 : vector<28x512xf32>
    %22 = vector.extract_strided_slice %21 {offsets = [0, 0], sizes = [27, 512], strides = [1, 1]} : vector<28x512xf32> to vector<27x512xf32>
    %23 = vector.extract_strided_slice %21 {offsets = [1, 0], sizes = [27, 512], strides = [1, 1]} : vector<28x512xf32> to vector<27x512xf32>
    %24 = arith.maximumf %22, %23 : vector<27x512xf32>
    %25 = vector.extract_strided_slice %24 {offsets = [0, 32], sizes = [27, 480], strides = [1, 1]} : vector<27x512xf32> to vector<27x480xf32>
    %26 = vector.extract_strided_slice %24 {offsets = [0, 0], sizes = [27, 32], strides = [1, 1]} : vector<27x512xf32> to vector<27x32xf32>
    %27 = tpu.concatenate %25, %26 in 1 : vector<27x480xf32>, vector<27x32xf32> -> vector<27x512xf32>
    %28 = arith.maximumf %24, %27 : vector<27x512xf32>
    %29 = vector.extract_strided_slice %28 {offsets = [0, 0], sizes = [1, 512], strides = [1, 1]} : vector<27x512xf32> to vector<1x512xf32>
    %30 = vector.extract_strided_slice %28 {offsets = [2, 0], sizes = [1, 512], strides = [1, 1]} : vector<27x512xf32> to vector<1x512xf32>
    %31 = vector.extract_strided_slice %28 {offsets = [4, 0], sizes = [1, 512], strides = [1, 1]} : vector<27x512xf32> to vector<1x512xf32>
    %32 = vector.extract_strided_slice %28 {offsets = [6, 0], sizes = [1, 512], strides = [1, 1]} : vector<27x512xf32> to vector<1x512xf32>
    %33 = vector.extract_strided_slice %28 {offsets = [8, 0], sizes = [1, 512], strides = [1, 1]} : vector<27x512xf32> to vector<1x512xf32>
    %34 = vector.extract_strided_slice %28 {offsets = [10, 0], sizes = [1, 512], strides = [1, 1]} : vector<27x512xf32> to vector<1x512xf32>
    %35 = vector.extract_strided_slice %28 {offsets = [12, 0], sizes = [1, 512], strides = [1, 1]} : vector<27x512xf32> to vector<1x512xf32>
    %36 = tpu.concatenate %29, %30, %31, %32, %33, %34, %35 in 1 : vector<1x512xf32>, vector<1x512xf32>, vector<1x512xf32>, vector<1x512xf32>, vector<1x512xf32>, vector<1x512xf32>, vector<1x512xf32> -> vector<1x3584xf32>
    %37 = vector.extract_strided_slice %28 {offsets = [14, 0], sizes = [1, 512], strides = [1, 1]} : vector<27x512xf32> to vector<1x512xf32>
    %38 = vector.extract_strided_slice %28 {offsets = [16, 0], sizes = [1, 512], strides = [1, 1]} : vector<27x512xf32> to vector<1x512xf32>
    %39 = vector.extract_strided_slice %28 {offsets = [18, 0], sizes = [1, 512], strides = [1, 1]} : vector<27x512xf32> to vector<1x512xf32>
    %40 = vector.extract_strided_slice %28 {offsets = [20, 0], sizes = [1, 512], strides = [1, 1]} : vector<27x512xf32> to vector<1x512xf32>
    %41 = vector.extract_strided_slice %28 {offsets = [22, 0], sizes = [1, 512], strides = [1, 1]} : vector<27x512xf32> to vector<1x512xf32>
    %42 = vector.extract_strided_slice %28 {offsets = [24, 0], sizes = [1, 512], strides = [1, 1]} : vector<27x512xf32> to vector<1x512xf32>
    %43 = vector.extract_strided_slice %28 {offsets = [26, 0], sizes = [1, 512], strides = [1, 1]} : vector<27x512xf32> to vector<1x512xf32>
    %44 = tpu.concatenate %37, %38, %39, %40, %41, %42, %43 in 1 : vector<1x512xf32>, vector<1x512xf32>, vector<1x512xf32>, vector<1x512xf32>, vector<1x512xf32>, vector<1x512xf32>, vector<1x512xf32> -> vector<1x3584xf32>
    %45 = tpu.concatenate %36, %44 in 0 : vector<1x3584xf32>, vector<1x3584xf32> -> vector<2x3584xf32>
    %c0_26 = arith.constant 0 : index
    %c0_27 = arith.constant 0 : index
    %46 = vector.load %arg4[%c0_26, %c0_27] : memref<3584x10xf32, #tpu.memory_space<vmem>>, vector<3584x10xf32>
    %cst_28 = arith.constant dense<0.000000e+00> : vector<2x10xf32>
    %47 = tpu.matmul %45, %46, %cst_28 {dimension_numbers = #tpu.dot_dimension_numbers<[1], [0], [0], [1], [0, 0, 1, 1], [], []>} : vector<2x3584xf32>, vector<3584x10xf32>, vector<2x10xf32> -> vector<2x10xf32>
    %c0_29 = arith.constant 0 : index
    %c0_30 = arith.constant 0 : index
    %48 = vector.load %arg5[%c0_29, %c0_30] : memref<1x10xf32, #tpu.memory_space<vmem>>, vector<1x10xf32>
    %49 = vector.broadcast %48 : vector<1x10xf32> to vector<2x10xf32>
    %50 = arith.addf %47, %49 : vector<2x10xf32>
    %c0_31 = arith.constant 0 : index
    %c0_32 = arith.constant 0 : index
    %51 = vector.load %arg6[%c0_31, %c0_32] : memref<2x10xf32, #tpu.memory_space<vmem>>, vector<2x10xf32>
    tpu.vector_store %arg6[%c0_31, %c0_32], %50 {strides = array<i32>} : memref<2x10xf32, #tpu.memory_space<vmem>>, vector<2x10xf32>,
    return
  }
  func.func @transform_0(%arg0: i32) -> (i32, i32, i32, i32) {
    %c0_i32 = arith.constant 0 : i32
    %c0_i32_0 = arith.constant 0 : i32
    %c0_i32_1 = arith.constant 0 : i32
    %c0_i32_2 = arith.constant 0 : i32
    return %arg0, %c0_i32, %c0_i32_0, %c0_i32_1 : i32, i32, i32, i32
  }
  func.func @transform_1(%arg0: i32) -> (i32, i32) {
    %c0_i32 = arith.constant 0 : i32
    %c0_i32_0 = arith.constant 0 : i32
    %c0_i32_1 = arith.constant 0 : i32
    return %c0_i32, %c0_i32_0 : i32, i32
  }
  func.func @transform_2(%arg0: i32) -> (i32, i32) {
    %c0_i32 = arith.constant 0 : i32
    %c0_i32_0 = arith.constant 0 : i32
    %c0_i32_1 = arith.constant 0 : i32
    return %c0_i32, %c0_i32_0 : i32, i32
  }
  func.func @transform_3(%arg0: i32) -> (i32, i32) {
    %c0_i32 = arith.constant 0 : i32
    %c0_i32_0 = arith.constant 0 : i32
    %c0_i32_1 = arith.constant 0 : i32
    return %c0_i32, %c0_i32_0 : i32, i32
  }
  func.func @transform_4(%arg0: i32) -> (i32, i32) {
    %c0_i32 = arith.constant 0 : i32
    %c0_i32_0 = arith.constant 0 : i32
    %c0_i32_1 = arith.constant 0 : i32
    return %c0_i32, %c0_i32_0 : i32, i32
  }
  func.func @transform_5(%arg0: i32) -> (i32, i32) {
    %c0_i32 = arith.constant 0 : i32
    %c0_i32_0 = arith.constant 0 : i32
    return %arg0, %c0_i32 : i32, i32
  }
}

</mosaic_0001>

<bundles_post_ra>
// kernel: tpu_custom_call.1
= control target key start
LH: loop header
LB: loop body
LE: loop exit
PB: predicated region body
PF: predicated region fallthrough
CT: control target
= control target key end

     0   :  { %s3191_s22 = smov 16   ;;  %v3192_v4 = vmov 0.0   ;;  %s3193_s18 = smov 32   ;;  %s5126_s0 = inlined_call_operand.vmem [shape: f32[2,1,16,16], index: 0, kind: input, shape index: {}]   ;;  %s5127_s1 = inlined_call_operand.vmem [shape: f32[48,512], index: 1, kind: input, shape index: {}]   ;;  %s5128_s2 = inlined_call_operand.vmem [shape: f32[1,512], index: 2, kind: input, shape index: {}]   ;;  %s5129_s3 = inlined_call_operand.vmem [shape: f32[3584,10], index: 3, kind: input, shape index: {}]   ;;  %s5130_s4 = inlined_call_operand.vmem [shape: f32[1,10], index: 4, kind: input, shape index: {}]   ;;  %s5131_s5 = inlined_call_operand.hbm [shape: f32[2,10], index: 5, kind: output, shape index: {}]  }
   0x1   :  { %v2127_v0 = vld [vmem:[%s5126_s0 + $0x11] sm:$0xff]  ;;  %v23_v1 = vld [vmem:[%s5126_s0 + $0x1] sm:$0xff]  ;;  %205 = vmatprep.mubr.f32.mxu0 %v3192_v4  ;;  %294 = vmatprep.mubr.f32.mxu1 %v3192_v4  ;;  %v24_v8 = vld [vmem:[%s5126_s0 + $0x9] sm:$0x3f] }
   0x2   :  { %58 = vrot.lane.b32.xlu1 %v2127_v0, %s3191_s22  ;;  %29 = vrot.lane.b32.xlu0 %v23_v1, %s3191_s22  ;;  %v2129_v2 = vld [vmem:[%s5126_s0 + $0x12] sm:$0xff]  ;;  %v25_v3 = vld [vmem:[%s5126_s0 + $0x2] sm:$0xff] }
   0x3   :  { %v85_v5 = vld [vmem:[%s5127_s1 + $0x8] sm:$0xff]  ;;  %v87_v7 = vld [vmem:[%s5127_s1 + $0x18] sm:$0xff]  ;;  %v84_v12 = vld [vmem:[%s5127_s1] sm:$0xff] }
   0x4   :  { %v89_v6 = vld [vmem:[%s5127_s1 + $0x28] sm:$0xff]  ;;  %v91_v11 = vld [vmem:[%s5127_s1 + $0x38] sm:$0xff]  ;;  %v88_v13 = vld [vmem:[%s5127_s1 + $0x20] sm:$0xff] }
   0x5   :  { %v26_v9 = vld [vmem:[%s5126_s0 + $0xa] sm:$0x3f]  ;;  %v2650_v10 = vpack.c.bf16 %v89_v6, %v85_v5  ;;  %v2662_v14 = vpack.c.bf16 %v91_v11, %v87_v7  ;;  %v2652_v15 = vpack.c.bf16 %v88_v13, %v84_v12  ;;  %v86_v16 = vld [vmem:[%s5127_s1 + $0x10] sm:$0xff]  ;;  %v95_v21 = vld [vmem:[%s5127_s1 + $0x58] sm:$0xff] }
   0x6   :  { %66 = vrot.lane.b32.xlu1 %v2129_v2, %s3193_s18  ;;  %37 = vrot.lane.b32.xlu0 %v25_v3, %s3193_s18  ;;  %v90_v17 = vld [vmem:[%s5127_s1 + $0x30] sm:$0xff]  ;;  %v93_v19 = vld [vmem:[%s5127_s1 + $0x48] sm:$0xff] }
   0x7   :  { %2651 = vmatprep.subr.bf16.mxu0 %v2650_v10  ;;  %v2664_v18 = vpack.c.bf16 %v90_v17, %v86_v16  ;;  %v97_v20 = vld [vmem:[%s5127_s1 + $0x68] sm:$0xff]  ;;  %2663 = vmatprep.subr.bf16.mxu1 %v2662_v14  ;;  %v99_v23 = vld [vmem:[%s5127_s1 + $0x78] sm:$0xff]  ;;  %v92_v24 = vld [vmem:[%s5127_s1 + $0x40] sm:$0xff] }
   0x8   :  { %2653 = vmatpush1.bf16.msra.mxu0 %v2652_v15  ;;  %v2654_v22 = vpack.c.bf16 %v97_v20, %v93_v19  ;;  %v96_v25 = vld [vmem:[%s5127_s1 + $0x60] sm:$0xff]  ;;  %v2128_v26 = vld [vmem:[%s5126_s0 + $0x19] sm:$0x3f]  ;;  %v2666_v27 = vpack.c.bf16 %v99_v23, %v95_v21  ;;  %v94_v29 = vld [vmem:[%s5127_s1 + $0x50] sm:$0xff] }
   0x9   :  { %2665 = vmatpush1.bf16.msra.mxu1 %v2664_v18  ;;  %v2656_v28 = vpack.c.bf16 %v96_v25, %v92_v24  ;;  %v98_v30 = vld [vmem:[%s5127_s1 + $0x70] sm:$0xff]  ;;  %v2130_v31 = vld [vmem:[%s5126_s0 + $0x1a] sm:$0x3f]  ;;  %v101_v33 = vld [vmem:[%s5127_s1 + $0x88] sm:$0xff] }
   0xa   :  { %31 = vrot.lane.b32.xlu0 %v24_v8, %s3191_s22  ;;  %39 = vrot.lane.b32.xlu1 %v26_v9, %s3193_s18  ;;  %v2668_v32 = vpack.c.bf16 %v98_v30, %v94_v29  ;;  %v105_v34 = vld [vmem:[%s5127_s1 + $0xa8] sm:$0xff]  ;;  %v103_v35 = vld [vmem:[%s5127_s1 + $0x98] sm:$0xff] }
   0xb   :  { %2655 = vmatprep.subr.bf16.mxu0 %v2654_v22  ;;  %2667 = vmatprep.subr.bf16.mxu1 %v2666_v27  ;;  %v107_v36 = vld [vmem:[%s5127_s1 + $0xb8] sm:$0xff]  ;;  %v2658_v37 = vpack.c.bf16 %v105_v34, %v101_v33  ;;  %v100_v39 = vld [vmem:[%s5127_s1 + $0x80] sm:$0xff]  ;;  %v102_v41 = vld [vmem:[%s5127_s1 + $0x90] sm:$0xff] }
   0xc   :  { %2657 = vmatpush1.bf16.msra.mxu0 %v2656_v28  ;;  %v2670_v38 = vpack.c.bf16 %v107_v36, %v103_v35  ;;  %v104_v40 = vld [vmem:[%s5127_s1 + $0xa0] sm:$0xff]  ;;  %v106_v43 = vld [vmem:[%s5127_s1 + $0xb0] sm:$0xff] }
   0xd   :  { %2669 = vmatpush1.bf16.msra.mxu1 %v2668_v32  ;;  %v2660_v42 = vpack.c.bf16 %v104_v40, %v100_v39  ;;  %v2672_v44 = vpack.c.bf16 %v106_v43, %v102_v41 }
   0xe   :  { %60 = vrot.lane.b32.xlu0 %v2128_v26, %s3191_s22  ;;  %68 = vrot.lane.b32.xlu1 %v2130_v31, %s3193_s18 }
   0xf   :  { %10 = vsyncpa [#allocation3], 0  ;;  %2659 = vmatprep.subr.bf16.mxu0 %v2658_v37  ;;  %2671 = vmatprep.subr.bf16.mxu1 %v2670_v38  ;;  %vm43_vm0 = vcmask 130048   ;;  %v21_v47 = vld [vmem:[%s5126_s0] sm:$0xff]  ;;  %v2125_v48 = vld [vmem:[%s5126_s0 + $0x10] sm:$0xff]  ;;  %vm46_vm1 = vcmask 261120  }
  0x10   :  { %2661 = vmatpush1.bf16.msra.mxu0 %v2660_v42  ;;  %vm130_vm2 = vcmask 392192   ;;  %v22_v55 = vld [vmem:[%s5126_s0 + $0x8] sm:$0x3f]  ;;  %vm78_vm3 = vcmask 1045504   ;;  %v2126_v61 = vld [vmem:[%s5126_s0 + $0x18] sm:$0x3f] }
  0x11   :  { %2673 = vmatpush1.bf16.msra.mxu1 %v2672_v44  ;;  %v690_v6 = vld [vmem:[%s5129_s3 + $0x80] sm:$0xff]  ;;  %v691_v7 = vld [vmem:[%s5129_s3 + $0x88] sm:$0xff]  ;;  %v692_v16 = vld [vmem:[%s5129_s3 + $0x90] sm:$0xff]  ;;  %vm351_vm4 = vcmask 1046528   ;;  %s3194_s7 = smov 96   ;;  %vm460_vm5 = vcmask 785408  }
  0x12   :  { %v674_v8 = vld [vmem:[%s5129_s3] sm:$0xff]  ;;  %v2674_v9 = vpack.c.bf16 %v691_v7, %v690_v6  ;;  %v723_v11 = vld [vmem:[%s5129_s3 + $0x188] sm:$0xff]  ;;  %v693_v18 = vld [vmem:[%s5129_s3 + $0x98] sm:$0xff]  ;;  %vm645_vm6 = vcmask 1040384   ;;  %vm2109_vm7 = vcmask 74752  }
  0x13   :  { %v722_v10 = vld [vmem:[%s5129_s3 + $0x180] sm:$0xff]  ;;  %v707_v15 = vld [vmem:[%s5129_s3 + $0x108] sm:$0xff]  ;;  %v676_v19 = vld [vmem:[%s5129_s3 + $0x10] sm:$0xff]  ;;  %v2678_v21 = vpack.c.bf16 %v693_v18, %v692_v16 }
  0x14   :  { %v2706_v13 = vpack.c.bf16 %v723_v11, %v722_v10  ;;  %v706_v14 = vld [vmem:[%s5129_s3 + $0x100] sm:$0xff]  ;;  %2675 = vmatprep.subr.bf16.mxu0 %v2674_v9  ;;  %v677_v20 = vld [vmem:[%s5129_s3 + $0x18] sm:$0xff]  ;;  %v724_v23 = vld [vmem:[%s5129_s3 + $0x190] sm:$0xff] }
  0x15   :  { %v2708_v17 = vpack.c.bf16 %v707_v15, %v706_v14  ;;  %v2680_v22 = vpack.c.bf16 %v677_v20, %v676_v19  ;;  %v725_v24 = vld [vmem:[%s5129_s3 + $0x198] sm:$0xff]  ;;  %v708_v25 = vld [vmem:[%s5129_s3 + $0x110] sm:$0xff]  ;;  %v694_v28 = vld [vmem:[%s5129_s3 + $0xa0] sm:$0xff] }
  0x16   :  { %2707 = vmatprep.subr.bf16.mxu1 %v2706_v13  ;;  %v2710_v26 = vpack.c.bf16 %v725_v24, %v724_v23  ;;  %v709_v27 = vld [vmem:[%s5129_s3 + $0x118] sm:$0xff]  ;;  %v695_v29 = vld [vmem:[%s5129_s3 + $0xa8] sm:$0xff]  ;;  %v678_v32 = vld [vmem:[%s5129_s3 + $0x20] sm:$0xff] }
  0x17   :  { %v2712_v30 = vpack.c.bf16 %v709_v27, %v708_v25  ;;  %v2682_v31 = vpack.c.bf16 %v695_v29, %v694_v28  ;;  %v679_v33 = vld [vmem:[%s5129_s3 + $0x28] sm:$0xff]  ;;  %v726_v34 = vld [vmem:[%s5129_s3 + $0x1a0] sm:$0xff]  ;;  %v696_v40 = vld [vmem:[%s5129_s3 + $0xb0] sm:$0xff] }
  0x18   :  { %v727_v35 = vld [vmem:[%s5129_s3 + $0x1a8] sm:$0xff]  ;;  %v710_v36 = vld [vmem:[%s5129_s3 + $0x120] sm:$0xff]  ;;  %v2684_v38 = vpack.c.bf16 %v679_v33, %v678_v32  ;;  %v697_v41 = vld [vmem:[%s5129_s3 + $0xb8] sm:$0xff] }
  0x19   :  { %v711_v37 = vld [vmem:[%s5129_s3 + $0x128] sm:$0xff]  ;;  %v2714_v39 = vpack.c.bf16 %v727_v35, %v726_v34  ;;  %v680_v42 = vld [vmem:[%s5129_s3 + $0x30] sm:$0xff]  ;;  %v2686_v44 = vpack.c.bf16 %v697_v41, %v696_v40 }
  0x1a   :  { %v2716_v43 = vpack.c.bf16 %v711_v37, %v710_v36 }
  0x74   :  { %v59_v45 = vpop.permute.xlu1 %58  ;;  %v30_v46 = vpop.permute.xlu0 %29 }
  0x75   :  { %v44_v49 = vsel %vm43_vm0, %v21_v47, %v30_v46  ;;  %v72_v52 = vsel %vm43_vm0, %v2125_v48, %v59_v45  ;;  %v681_v45 = vld [vmem:[%s5129_s3 + $0x38] sm:$0xff]  ;;  %v728_v46 = vld [vmem:[%s5129_s3 + $0x1b0] sm:$0xff] }
  0x76   :  { %v729_v47 = vld [vmem:[%s5129_s3 + $0x1b8] sm:$0xff] }
  0x77   :  { %v2718_v48 = vpack.c.bf16 %v729_v47, %v728_v46 }
  0x78   :  { %v67_v50 = vpop.permute.xlu1 %66  ;;  %v38_v51 = vpop.permute.xlu0 %37 }
  0x79   :  { %v47_v53 = vsel %vm46_vm1, %v44_v49, %v38_v51  ;;  %v74_v54 = vsel %vm46_vm1, %v72_v52, %v67_v50  ;;  %v712_v49 = vld [vmem:[%s5129_s3 + $0x130] sm:$0xff]  ;;  %v713_v50 = vld [vmem:[%s5129_s3 + $0x138] sm:$0xff]  ;;  %v698_v51 = vld [vmem:[%s5129_s3 + $0xc0] sm:$0xff] }
  0x7a   :  { %2131 = vmatmul.mubr.msk.f32.vlgmr.msra.gmra.mrb[0].mxu0 %vm130_vm2, %v47_v53  ;;  %2135 = vmatmul.mubr.msk.f32.vlgmr.msra.gmra.mrb[0].mxu1 %vm130_vm2, %v47_v53  ;;  %v79_v58 = vrot.slane %v74_v54, 2  ;;  %v699_v52 = vld [vmem:[%s5129_s3 + $0xc8] sm:$0xff]  ;;  %v2688_v53 = vpack.c.bf16 %v681_v45, %v680_v42  ;;  %v730_v54 = vld [vmem:[%s5129_s3 + $0x1c0] sm:$0xff]  ;;  %v685_v45 = vld [vmem:[%s5129_s3 + $0x58] sm:$0xff] }
  0x7b   :  { %211 = vmatprep.mubr.f32.mxu0 %v3192_v4  ;;  %300 = vmatprep.mubr.f32.mxu1 %v3192_v4 }
  0x7c   :  { %v32_v56 = vpop.permute.xlu0 %31  ;;  %v40_v57 = vpop.permute.xlu1 %39  ;;  %2709 = vmatpush3.bf16.msra.mxu1 %v2708_v17 }
  0x7d   :  { %v45_v59 = vsel %vm43_vm0, %v22_v55, %v32_v56  ;;  %2711 = vmatprep.subr.bf16.mxu1 %v2710_v26  ;;  %v731_v55 = vld [vmem:[%s5129_s3 + $0x1c8] sm:$0xff]  ;;  %v2720_v56 = vpack.c.bf16 %v713_v50, %v712_v49 }
  0x7e   :  { %v48_v60 = vsel %vm46_vm1, %v45_v59, %v40_v57  ;;  %v2690_v57 = vpack.c.bf16 %v699_v52, %v698_v51  ;;  %v683_v59 = vld [vmem:[%s5129_s3 + $0x48] sm:$0xff] }
  0x7f   :  { %v83_v62 = vsel %vm78_vm3, %v48_v60, %v79_v58  ;;  %v714_v60 = vld [vmem:[%s5129_s3 + $0x140] sm:$0xff] }
  0x80   :  { %v61_v63 = vpop.permute.xlu0 %60  ;;  %2132 = vmatmul.mubr.msk.f32.gmra.mrb[2].mxu0 %vm130_vm2, %v83_v62  ;;  %2136 = vmatmul.mubr.msk.f32.gmra.mrb[2].mxu1 %vm130_vm2, %v83_v62  ;;  %v69_v0 = vpop.permute.xlu1 %68  ;;  %v715_v62 = vld [vmem:[%s5129_s3 + $0x148] sm:$0xff] }
  0x81   :  { %v73_v1 = vsel %vm43_vm0, %v2126_v61, %v61_v63  ;;  %217 = vmatprep.mubr.f32.mxu0 %v3192_v4  ;;  %306 = vmatprep.mubr.f32.mxu1 %v3192_v4  ;;  %v2722_v61 = vpack.c.bf16 %v731_v55, %v730_v54  ;;  %v700_v63 = vld [vmem:[%s5129_s3 + $0xd0] sm:$0xff] }
  0x82   :  { %v75_v2 = vsel %vm46_vm1, %v73_v1, %v69_v0  ;;  %2713 = vmatpush3.bf16.msra.mxu1 %v2712_v30  ;;  %v701_v0 = vld [vmem:[%s5129_s3 + $0xd8] sm:$0xff] }
  0x83   :  { %v80_v3 = vrot.slane %v75_v2, 2  ;;  %2715 = vmatprep.subr.bf16.mxu1 %v2714_v39  ;;  %v2724_v2 = vpack.c.bf16 %v715_v62, %v714_v60 }
  0x85   :  { %v81_v5 = vsel %vm78_vm3, %v79_v58, %v80_v3  ;;  %v682_v58 = vld [vmem:[%s5129_s3 + $0x40] sm:$0xff] }
  0x86   :  { %2133 = vmatmul.mubr.msk.f32.gmra.mrb[4].mxu0 %vm130_vm2, %v81_v5  ;;  %2137 = vmatmul.mubr.msk.f32.gmra.mrb[4].mxu1 %vm130_vm2, %v81_v5  ;;  %v2692_v1 = vpack.c.bf16 %v683_v59, %v682_v58  ;;  %v110_v5 = vlaneseq }
  0x87   :  { %223 = vmatprep.mubr.f32.mxu0 %v3192_v4  ;;  %312 = vmatprep.mubr.f32.mxu1 %v3192_v4  ;;  %v675_v4 = vld [vmem:[%s5129_s3 + $0x8] sm:$0xff] }
  0x88   :  { %v2676_v12 = vpack.c.bf16 %v675_v4, %v674_v8  ;;  %2717 = vmatpush3.bf16.msra.mxu1 %v2716_v43  ;;  %v111_v6 = vshrl.u32 %v110_v5, 7  ;;  %v108_v8 = vld [vmem:[%s5128_s2] sm:$0xf] }
  0x89   :  { %2719 = vmatprep.subr.bf16.mxu1 %v2718_v48 }
  0x8a   :  { %2134 = vmatmul.mubr.msk.f32.gmra.mrb[6].mxu0 %vm130_vm2, %v80_v3  ;;  %2138 = vmatmul.mubr.msk.f32.gmra.mrb[6].mxu1 %vm130_vm2, %v80_v3  ;;  %v2694_v3 = vpack.c.bf16 %v701_v0, %v700_v63  ;;  %v112_v7 = vsub.s32 0, %v111_v6  ;;  %v120_v9 = vsub.s32 2, %v111_v6  ;;  %v116_v4 = vsub.s32 1, %v111_v6 }
  0x8b   :  { %2677 = vmatpush3.bf16.msra.mxu0 %v2676_v12  ;;  %v124_v10 = vsub.s32 3, %v111_v6 }
  0x8c   :  { %2679 = vmatprep.subr.bf16.mxu0 %v2678_v21  ;;  %2721 = vmatpush3.bf16.msra.mxu1 %v2720_v56  ;;  %v3495_v11 = vrot.slane %v108_v8, %v112_v7  ;;  %v3497_v12 = vrot.slane %v108_v8, %v120_v9  ;;  %v3499_v13 = vrot.slane %v108_v8, %v116_v4 }
  0x8d   :  { %2723 = vmatprep.subr.bf16.mxu1 %v2722_v61  ;;  %v3501_v16 = vrot.slane %v108_v8, %v124_v10 }
  0x8f   :  { %2681 = vmatpush3.bf16.msra.mxu0 %v2680_v22 }
  0x90   :  { %2683 = vmatprep.subr.bf16.mxu0 %v2682_v31  ;;  %2725 = vmatpush3.bf16.msra.mxu1 %v2724_v2 }
  0x93   :  { %2685 = vmatpush3.bf16.msra.mxu0 %v2684_v38 }
  0x94   :  { %2687 = vmatprep.subr.bf16.mxu0 %v2686_v44  ;;  %v684_v44 = vld [vmem:[%s5129_s3 + $0x50] sm:$0xff] }
  0x95   :  { %v2696_v51 = vpack.c.bf16 %v685_v45, %v684_v44  ;;  %v703_v44 = vld [vmem:[%s5129_s3 + $0xe8] sm:$0xff] }
  0x97   :  { %2689 = vmatpush3.bf16.msra.mxu0 %v2688_v53 }
  0x98   :  { %2691 = vmatprep.subr.bf16.mxu0 %v2690_v57 }
  0x9b   :  { %2693 = vmatpush3.bf16.msra.mxu0 %v2692_v1 }
  0x9c   :  { %2695 = vmatprep.subr.bf16.mxu0 %v2694_v3 }
  0x9f   :  { %2697 = vmatpush3.bf16.msra.mxu0 %v2696_v51 }
 0x14d   :  { %v207_v14 = vpop.f32.mrb[0].mxu0  ;;  %v296_v15 = vpop.f32.mrb[0].mxu1 }
 0x14e   :  { %v209_v17 = vpop.f32.mrb[1].mxu0  ;;  %v298_v18 = vpop.f32.mrb[1].mxu1  ;;  %v208_v19 = vadd.f32 %v207_v14, %v3495_v11  ;;  %v297_v20 = vadd.f32 %v296_v15, %v3497_v12 }
 0x14f   :  { %v210_v21 = vadd.f32 %v209_v17, %v3499_v13  ;;  %v299_v22 = vadd.f32 %v298_v18, %v3501_v16 }
 0x150   :  { %v319_v23 = vmax.f32 %v208_v19, 0.0  ;;  %v321_v26 = vmax.f32 %v297_v20, 0.0 }
 0x151   :  { %v320_v27 = vmax.f32 %v210_v21, 0.0  ;;  %v322_v32 = vmax.f32 %v299_v22, 0.0 }
 0x152   :  { %v352_v37 = vrot.slane %v319_v23, 1  ;;  %v358_v40 = vrot.slane %v321_v26, 1 }
 0x153   :  { %v213_v24 = vpop.f32.mrb[2].mxu0  ;;  %v302_v25 = vpop.f32.mrb[2].mxu1  ;;  %v355_v41 = vrot.slane %v320_v27, 1  ;;  %v361_v46 = vrot.slane %v322_v32, 1 }
 0x154   :  { %v3508_v28 = vadd.f32 %v213_v24, %v3495_v11  ;;  %v3511_v29 = vadd.f32 %v302_v25, %v3497_v12  ;;  %v215_v30 = vpop.f32.mrb[3].mxu0  ;;  %v304_v31 = vpop.f32.mrb[3].mxu1 }
 0x155   :  { %v216_v33 = vadd.f32 %v215_v30, %v3499_v13  ;;  %v3515_v34 = vadd.f32 %v304_v31, %v3501_v16 }
 0x156   :  { %v323_v35 = vmax.f32 %v3508_v28, 0.0  ;;  %v325_v36 = vmax.f32 %v3511_v29, 0.0 }
 0x157   :  { %v324_v38 = vmax.f32 %v216_v33, 0.0  ;;  %v326_v39 = vmax.f32 %v3515_v34, 0.0 }
 0x158   :  { %v353_v42 = vrot.slane %v323_v35, 1  ;;  %v359_v43 = vrot.slane %v325_v36, 1 }
 0x159   :  { %v356_v47 = vrot.slane %v324_v38, 1  ;;  %v362_v48 = vrot.slane %v326_v39, 1  ;;  %v219_v49 = vpop.f32.mrb[4].mxu0  ;;  %v308_v50 = vpop.f32.mrb[4].mxu1 }
 0x15a   :  { %v220_v52 = vadd.f32 %v219_v49, %v3495_v11  ;;  %v3530_v53 = vadd.f32 %v308_v50, %v3497_v12  ;;  %v221_v54 = vpop.f32.mrb[5].mxu0  ;;  %v310_v55 = vpop.f32.mrb[5].mxu1  ;;  %v354_v56 = vsel %vm351_vm4, %v352_v37, %v353_v42  ;;  %v360_v57 = vsel %vm351_vm4, %v358_v40, %v359_v43  ;;  %v734_v49 = vld [vmem:[%s5129_s3 + $0x1e0] sm:$0xff] }
 0x15b   :  { %v3535_v58 = vadd.f32 %v221_v54, %v3499_v13  ;;  %v311_v59 = vadd.f32 %v310_v55, %v3501_v16  ;;  %v357_v60 = vsel %vm351_vm4, %v355_v41, %v356_v47  ;;  %v363_v61 = vsel %vm351_vm4, %v361_v46, %v362_v48  ;;  %v735_v54 = vld [vmem:[%s5129_s3 + $0x1e8] sm:$0xff]  ;;  %v704_v55 = vld [vmem:[%s5129_s3 + $0xf0] sm:$0xff] }
 0x15c   :  { %v327_v62 = vmax.f32 %v220_v52, 0.0  ;;  %v329_v63 = vmax.f32 %v3530_v53, 0.0  ;;  %v3541_v0 = vmax.f32 %v320_v27, %v357_v60  ;;  %v3543_v1 = vmax.f32 %v319_v23, %v354_v56  ;;  %v705_v56 = vld [vmem:[%s5129_s3 + $0xf8] sm:$0xff]  ;;  %v718_v60 = vld [vmem:[%s5129_s3 + $0x160] sm:$0xff] }
 0x15d   :  { %v328_v2 = vmax.f32 %v3535_v58, 0.0  ;;  %v330_v3 = vmax.f32 %v311_v59, 0.0  ;;  %v225_v5 = vpop.f32.mrb[6].mxu0  ;;  %v314_v6 = vpop.f32.mrb[6].mxu1  ;;  %v3546_v7 = vmax.f32 %v322_v32, %v363_v61  ;;  %v3548_v8 = vmax.f32 %v321_v26, %v360_v57  ;;  %v719_v61 = vld [vmem:[%s5129_s3 + $0x168] sm:$0xff] }
 0x15e   :  { %v364_v9 = vrot.slane %v327_v62, 1  ;;  %v368_v4 = vrot.slane %v329_v63, 1  ;;  %v226_v10 = vadd.f32 %v225_v5, %v3495_v11  ;;  %v315_v14 = vadd.f32 %v314_v6, %v3497_v12  ;;  %v227_v15 = vpop.f32.mrb[7].mxu0  ;;  %v316_v17 = vpop.f32.mrb[7].mxu1  ;;  %v689_v6 = vld [vmem:[%s5129_s3 + $0x78] sm:$0xff] }
 0x15f   :  { %v366_v18 = vrot.slane %v328_v2, 1  ;;  %v370_v19 = vrot.slane %v330_v3, 1  ;;  %v228_v20 = vadd.f32 %v227_v15, %v3499_v13  ;;  %v3554_v21 = vadd.f32 %v316_v17, %v3501_v16  ;;  %v754_v17 = vld [vmem:[%s5129_s3 + $0x280] sm:$0xff] }
 0x160   :  { %v331_v22 = vmax.f32 %v226_v10, 0.0  ;;  %v333_v23 = vmax.f32 %v315_v14, 0.0  ;;  %v365_v24 = vsel %vm351_vm4, %v353_v42, %v364_v9  ;;  %v369_v25 = vsel %vm351_vm4, %v359_v43, %v368_v4  ;;  %v717_v42 = vld [vmem:[%s5129_s3 + $0x158] sm:$0xff]  ;;  %v702_v43 = vld [vmem:[%s5129_s3 + $0xe0] sm:$0xff] }
 0x161   :  { %v332_v26 = vmax.f32 %v228_v20, 0.0  ;;  %v334_v11 = vmax.f32 %v3554_v21, 0.0  ;;  %v3559_v27 = vmax.f32 %v323_v35, %v365_v24  ;;  %v367_v12 = vsel %vm351_vm4, %v356_v47, %v366_v18  ;;  %v732_v35 = vld [vmem:[%s5129_s3 + $0x1d0] sm:$0xff]  ;;  %v686_v47 = vld [vmem:[%s5129_s3 + $0x60] sm:$0xff] }
 0x162   :  { %v372_v28 = vrot.slane %v331_v22, 1  ;;  %v376_v29 = vrot.slane %v333_v23, 1  ;;  %v3562_v30 = vmax.f32 %v324_v38, %v367_v12  ;;  %v3564_v13 = vmax.f32 %v325_v36, %v369_v25  ;;  %v733_v38 = vld [vmem:[%s5129_s3 + $0x1d8] sm:$0xff]  ;;  %v716_v36 = vld [vmem:[%s5129_s3 + $0x150] sm:$0xff]  ;;  %v786_v12 = vld [vmem:[%s5129_s3 + $0x380] sm:$0xff] }
 0x163   :  { %v374_v16 = vrot.slane %v332_v26, 1  ;;  %v378_v31 = vrot.slane %v334_v11, 1  ;;  %v3127_v32 = vpack.i.bf16 %v3541_v0, %v3559_v27  ;;  %v371_v37 = vsel %vm351_vm4, %v362_v48, %v370_v19  ;;  %v687_v48 = vld [vmem:[%s5129_s3 + $0x68] sm:$0xff]  ;;  %v720_v25 = vld [vmem:[%s5129_s3 + $0x170] sm:$0xff] }
 0x164   :  { %v3132_v33 = vpack.i.bf16 %v3564_v13, %v3562_v30  ;;  %v3583_v40 = vmax.f32 %v326_v39, %v371_v37  ;;  %v373_v41 = vsel %vm351_vm4, %v364_v9, %v372_v28  ;;  %v377_v46 = vsel %vm351_vm4, %v368_v4, %v376_v29  ;;  %v736_v9 = vld [vmem:[%s5129_s3 + $0x1f0] sm:$0xff]  ;;  %v737_v4 = vld [vmem:[%s5129_s3 + $0x1f8] sm:$0xff] }
 0x165   :  { %3128 = vrot.lane.b32.xlu1 %v3127_v32, %s3194_s7  ;;  %v379_v34 = vsel %vm351_vm4, %v370_v19, %v378_v31  ;;  %v3597_v39 = vmax.f32 %v327_v62, %v373_v41  ;;  %v375_v45 = vsel %vm351_vm4, %v366_v18, %v374_v16  ;;  %v3142_v50 = vpack.i.bf16 %v3546_v7, %v3543_v1  ;;  %v688_v62 = vld [vmem:[%s5129_s3 + $0x70] sm:$0xff]  ;;  %v755_v18 = vld [vmem:[%s5129_s3 + $0x288] sm:$0xff]  ;;  %v738_v41 = vld [vmem:[%s5129_s3 + $0x200] sm:$0xff] }
 0x166   :  { %3133 = vrot.lane.b32.xlu0 %v3132_v33, %s3194_s7  ;;  %v3612_v51 = vmax.f32 %v330_v3, %v379_v34  ;;  %v3614_v52 = vmax.f32 %v328_v2, %v375_v45  ;;  %v3616_v53 = vmax.f32 %v329_v63, %v377_v46  ;;  %v3137_v57 = vpack.i.bf16 %v3583_v40, %v3548_v8  ;;  %v739_v45 = vld [vmem:[%s5129_s3 + $0x208] sm:$0xff]  ;;  %v756_v46 = vld [vmem:[%s5129_s3 + $0x290] sm:$0xff] }
 0x167   :  { %v2726_v58 = vpack.c.bf16 %v733_v38, %v732_v35  ;;  %v2728_v59 = vpack.c.bf16 %v717_v42, %v716_v36  ;;  %v3638_v63 = vmax.f32 %v331_v22, %v372_v28  ;;  %v3640_v2 = vmax.f32 %v333_v23, %v376_v29  ;;  %v787_v28 = vld [vmem:[%s5129_s3 + $0x388] sm:$0xff] }
 0x168   :  { %v2698_v3 = vpack.c.bf16 %v703_v44, %v702_v43  ;;  %v2700_v5 = vpack.c.bf16 %v687_v48, %v686_v47  ;;  %v3652_v10 = vmax.f32 %v332_v26, %v374_v16  ;;  %v2730_v14 = vpack.c.bf16 %v735_v54, %v734_v49  ;;  %v721_v26 = vld [vmem:[%s5129_s3 + $0x178] sm:$0xff] }
 0x169   :  { %3143 = vrot.lane.b32.xlu1 %v3142_v50, %s3194_s7  ;;  %2727 = vmatprep.subr.bf16.mxu1 %v2726_v58  ;;  %v2702_v15 = vpack.c.bf16 %v705_v56, %v704_v55  ;;  %v3661_v19 = vmax.f32 %v334_v11, %v378_v31  ;;  %v3152_v20 = vpack.i.bf16 %v3612_v51, %v3597_v39  ;;  %v757_v47 = vld [vmem:[%s5129_s3 + $0x298] sm:$0xff] }
 0x16a   :  { %3138 = vrot.lane.b32.xlu0 %v3137_v57, %s3194_s7  ;;  %2729 = vmatpush3.bf16.msra.mxu1 %v2728_v59  ;;  %v2732_v21 = vpack.c.bf16 %v719_v61, %v718_v60  ;;  %v3147_v22 = vpack.i.bf16 %v3616_v53, %v3614_v52  ;;  %v2704_v23 = vpack.c.bf16 %v689_v6, %v688_v62 }
 0x16b   :  { %2699 = vmatprep.subr.bf16.mxu0 %v2698_v3  ;;  %2731 = vmatprep.subr.bf16.mxu1 %v2730_v14  ;;  %v2734_v24 = vpack.c.bf16 %v737_v4, %v736_v9  ;;  %v2738_v11 = vpack.c.bf16 %v755_v18, %v754_v17  ;;  %v3162_v29 = vpack.i.bf16 %v3661_v19, %v3638_v63 }
 0x16c   :  { %2701 = vmatpush3.bf16.msra.mxu0 %v2700_v5  ;;  %v2736_v16 = vpack.c.bf16 %v721_v26, %v720_v25  ;;  %v3157_v31 = vpack.i.bf16 %v3640_v2, %v3652_v10  ;;  %v2770_v32 = vpack.c.bf16 %v787_v28, %v786_v12  ;;  %v2740_v59 = vpack.c.bf16 %v739_v45, %v738_v41  ;;  %v788_v25 = vld [vmem:[%s5129_s3 + $0x390] sm:$0xff] }
 0x16d   :  { %3153 = vrot.lane.b32.xlu1 %v3152_v20, %s3194_s7  ;;  %2703 = vmatprep.subr.bf16.mxu0 %v2702_v15  ;;  %v2742_v60 = vpack.c.bf16 %v757_v47, %v756_v46  ;;  %v770_v20 = vld [vmem:[%s5129_s3 + $0x300] sm:$0xff]  ;;  %v3818_v47 = vld [vmem:[%s5129_s3 + $0x328] sm:$0xff] }
 0x16e   :  { %3148 = vrot.lane.b32.xlu0 %v3147_v22, %s3194_s7  ;;  %2733 = vmatpush3.bf16.msra.mxu1 %v2732_v21  ;;  %v3813_v46 = vld [vmem:[%s5129_s3 + $0x320] sm:$0xff] }
 0x16f   :  { %2735 = vmatprep.subr.bf16.mxu1 %v2734_v24  ;;  %v741_v24 = vld [vmem:[%s5129_s3 + $0x218] sm:$0xff] }
 0x170   :  { %2705 = vmatpush3.bf16.msra.mxu0 %v2704_v23  ;;  %v740_v23 = vld [vmem:[%s5129_s3 + $0x210] sm:$0xff] }
 0x171   :  { %3163 = vrot.lane.b32.xlu1 %v3162_v29, %s3194_s7  ;;  %2739 = vmatprep.subr.bf16.mxu0 %v2738_v11  ;;  %v789_v29 = vld [vmem:[%s5129_s3 + $0x398] sm:$0xff] }
 0x172   :  { %3158 = vrot.lane.b32.xlu0 %v3157_v31, %s3194_s7  ;;  %2737 = vmatpush3.bf16.msra.mxu1 %v2736_v16  ;;  %v3763_v16 = vld [vmem:[%s5129_s3 + $0x310] sm:$0xff]  ;;  %v3768_v31 = vld [vmem:[%s5129_s3 + $0x318] sm:$0xff]  ;;  %v2774_v45 = vpack.c.bf16 %v789_v29, %v788_v25  ;;  %v3890_v25 = vld [vmem:[%s5129_s3 + $0x240] sm:$0xff] }
 0x173   :  { %2771 = vmatprep.subr.bf16.mxu1 %v2770_v32 }
 0x1d7   :  { %v3129_v33 = vpop.permute.xlu1 %3128 }
 0x1d8   :  { %v3130_v37 = vunpack.i.l.bf16 %v3129_v33  ;;  %v3134_v35 = vpop.permute.xlu0 %3133  ;;  %v3131_v42 = vunpack.i.h.bf16 %v3129_v33 }
 0x1d9   :  { %v3136_v38 = vunpack.i.h.bf16 %v3134_v35  ;;  %v3135_v36 = vunpack.i.l.bf16 %v3134_v35  ;;  %v758_v35 = vld [vmem:[%s5129_s3 + $0x2a0] sm:$0xff] }
 0x1db   :  { %v464_v43 = vsel %vm460_vm5, %v3130_v37, %v3135_v36  ;;  %v465_v44 = vsel %vm460_vm5, %v3135_v36, %v3136_v38  ;;  %v3144_v34 = vpop.permute.xlu1 %3143  ;;  %v3786_v36 = vld [vmem:[%s5129_s3 + $0x220] sm:$0xff] }
 0x1dc   :  { %v3702_v48 = vmax.f32 %v3559_v27, %v464_v43  ;;  %v3705_v49 = vmax.f32 %v3562_v30, %v465_v44  ;;  %v3146_v50 = vunpack.i.h.bf16 %v3144_v34  ;;  %v3145_v54 = vunpack.i.l.bf16 %v3144_v34  ;;  %v3139_v55 = vpop.permute.xlu0 %3138  ;;  %v3802_v43 = vld [vmem:[%s5129_s3 + $0x3a0] sm:$0xff] }
 0x1dd   :  { %v3141_v56 = vunpack.i.h.bf16 %v3139_v55  ;;  %v3140_v57 = vunpack.i.l.bf16 %v3139_v55  ;;  %v2744_v34 = vpack.c.bf16 %v741_v24, %v740_v23 }
 0x1de   :  { %v461_v58 = vsel %vm460_vm5, %v3145_v54, %v3131_v42  ;;  %v493_v61 = vsel %vm460_vm5, %v3146_v50, %v3145_v54  ;;  %v589_v30 = vrot.slane %v3702_v48, 5  ;;  %v590_v14 = vrot.slane %v3705_v49, 5 }
 0x1df   :  { %v3710_v62 = vmax.f32 %v3543_v1, %v461_v58  ;;  %v462_v27 = vsel %vm460_vm5, %v3131_v42, %v3140_v57  ;;  %v3713_v3 = vpop.permute.xlu1 %3153  ;;  %v466_v5 = vsel %vm460_vm5, %v3136_v38, %v3141_v56  ;;  %v494_v6 = vsel %vm460_vm5, %v3141_v56, %v3130_v37  ;;  %v759_v38 = vld [vmem:[%s5129_s3 + $0x2a8] sm:$0xff]  ;;  %v761_v58 = vld [vmem:[%s5129_s3 + $0x2b8] sm:$0xff] }
 0x1e0   :  { %v3719_v9 = vmax.f32 %v3541_v0, %v462_v27  ;;  %v3721_v4 = vpop.permute.xlu0 %3148  ;;  %v3725_v1 = vmax.f32 %v3564_v13, %v466_v5  ;;  %v3728_v15 = vmax.f32 %v3583_v40, %v494_v6  ;;  %v3156_v17 = vunpack.i.h.bf16 %v3713_v3  ;;  %v771_v0 = vld [vmem:[%s5129_s3 + $0x308] sm:$0xff]  ;;  %v3851_v6 = vld [vmem:[%s5129_s3 + $0x3b0] sm:$0xff] }
 0x1e1   :  { %v3155_v18 = vunpack.i.l.bf16 %v3713_v3  ;;  %v463_v21 = vsel %vm460_vm5, %v3140_v57, %v3146_v50  ;;  %v3151_v13 = vunpack.i.h.bf16 %v3721_v4  ;;  %v3150_v22 = vunpack.i.l.bf16 %v3721_v4  ;;  %v3797_v42 = vld [vmem:[%s5129_s3 + $0x228] sm:$0xff]  ;;  %v760_v50 = vld [vmem:[%s5129_s3 + $0x2b0] sm:$0xff]  ;;  %v3856_v4 = vld [vmem:[%s5129_s3 + $0x3b8] sm:$0xff] }
 0x1e2   :  { %v647_v40 = vsel %vm645_vm6, %v3719_v9, %v590_v14  ;;  %v646_v11 = vsel %vm645_vm6, %v3710_v62, %v589_v30  ;;  %v592_v12 = vrot.slane %v3728_v15, 5  ;;  %v591_v28 = vrot.slane %v3725_v1, 5  ;;  %v3861_v14 = vld [vmem:[%s5129_s3 + $0x330] sm:$0xff] }
 0x1e3   :  { %v495_v26 = vsel %vm460_vm5, %v3156_v17, %v3155_v18  ;;  %1193 = vmatprep.mubr.f32.mxu0 %v647_v40  ;;  %v3771_v32 = vmax.f32 %v3546_v7, %v493_v61  ;;  %v468_v37 = vsel %vm460_vm5, %v3150_v22, %v3151_v13  ;;  %v3789_v7 = vmax.f32 %v3548_v8, %v463_v21  ;;  %v791_v8 = vld [vmem:[%s5129_s3 + $0x3a8] sm:$0xff]  ;;  %v3823_v54 = vpop.permute.xlu1 %3163  ;;  %v3878_v40 = vld [vmem:[%s5129_s3 + $0x2c0] sm:$0xff] }
 0x1e4   :  { %v3774_v33 = vmax.f32 %v3612_v51, %v495_v26  ;;  %1194 = vmatmul.mubr.f32.vlgmr.msra.gmra.mrb[8].mxu0 %v646_v11  ;;  %v3792_v51 = vmax.f32 %v3614_v52, %v468_v37  ;;  %v2772_v41 = vpack.c.bf16 %v771_v0, %v770_v20  ;;  %v467_v44 = vsel %vm460_vm5, %v3155_v18, %v3150_v22  ;;  %v3842_v61 = vpop.permute.xlu0 %3158  ;;  %v3873_v22 = vld [vmem:[%s5129_s3 + $0x338] sm:$0xff]  ;;  %v3895_v26 = vld [vmem:[%s5129_s3 + $0x248] sm:$0xff] }
 0x1e5   :  { %2741 = vmatpush3.bf16.msra.mxu0 %v2740_v59  ;;  %v649_v52 = vsel %vm645_vm6, %v3771_v32, %v592_v12  ;;  %v648_v55 = vsel %vm645_vm6, %v3789_v7, %v591_v28  ;;  %v3835_v59 = vld [vmem:[%s5129_s3 + $0x230] sm:$0xff]  ;;  %v520_v27 = vrot.slane %v3771_v32, 2  ;;  %v518_v3 = vrot.slane %v3719_v9, 2 }
 0x1e6   :  { %2743 = vmatprep.subr.bf16.mxu0 %v2742_v60  ;;  %1263 = vmatprep.mubr.f32.mxu1 %v649_v52  ;;  %v2142_v56 = vrot.slane %v3774_v33, 7  ;;  %v2140_v57 = vrot.slane %v3792_v51, 7  ;;  %v3840_v60 = vld [vmem:[%s5129_s3 + $0x238] sm:$0xff]  ;;  %v2776_v30 = vpack.c.bf16 %v3768_v31, %v3763_v16  ;;  %v2746_v5 = vpack.c.bf16 %v759_v38, %v758_v35  ;;  %v794_v16 = vld [vmem:[%s5129_s3 + $0x3c0] sm:$0xff]  ;;  %v795_v31 = vld [vmem:[%s5129_s3 + $0x3c8] sm:$0xff] }
 0x1e7   :  { %1264 = vmatmul.mubr.f32.vlgmr.msra.gmra.mrb[8].mxu1 %v648_v55  ;;  %v469_v18 = vsel %vm460_vm5, %v3151_v13, %v3156_v17  ;;  %v3865_v20 = vmax.f32 %v3597_v39, %v467_v44  ;;  %v2748_v0 = vpack.c.bf16 %v3797_v42, %v3786_v36  ;;  %v2778_v21 = vpack.c.bf16 %v791_v8, %v3802_v43  ;;  %v763_v39 = vld [vmem:[%s5129_s3 + $0x2c8] sm:$0xff]  ;;  %v764_v55 = vld [vmem:[%s5129_s3 + $0x2d0] sm:$0xff] }
 0x1e8   :  { %2773 = vmatpush3.bf16.msra.mxu1 %v2772_v41  ;;  %v3166_v17 = vunpack.i.h.bf16 %v3823_v54  ;;  %v3165_v13 = vunpack.i.l.bf16 %v3823_v54  ;;  %v653_v23 = vsel %vm645_vm6, %v520_v27, %v2142_v56  ;;  %v651_v24 = vsel %vm645_vm6, %v518_v3, %v2140_v57  ;;  %v765_v56 = vld [vmem:[%s5129_s3 + $0x2d8] sm:$0xff]  ;;  %v778_v27 = vld [vmem:[%s5129_s3 + $0x340] sm:$0xff]  ;;  %v779_v3 = vld [vmem:[%s5129_s3 + $0x348] sm:$0xff] }
 0x1e9   :  { %2745 = vmatpush3.bf16.msra.mxu0 %v2744_v34  ;;  %2775 = vmatprep.subr.bf16.mxu1 %v2774_v45  ;;  %v3161_v11 = vunpack.i.h.bf16 %v3842_v61  ;;  %v3160_v12 = vunpack.i.l.bf16 %v3842_v61  ;;  %v2780_v28 = vpack.c.bf16 %v3818_v47, %v3813_v46  ;;  %v2750_v29 = vpack.c.bf16 %v761_v58, %v760_v50 }
 0x1ea   :  { %1403 = vmatprep.mubr.f32.mxu1 %v653_v23  ;;  %1333 = vmatprep.mubr.f32.mxu0 %v651_v24  ;;  %v2752_v37 = vpack.c.bf16 %v3840_v60, %v3835_v59  ;;  %v2782_v35 = vpack.c.bf16 %v3856_v4, %v3851_v6  ;;  %v2784_v38 = vpack.c.bf16 %v3873_v22, %v3861_v14  ;;  %v525_v43 = vrot.slane %v3710_v62, 4  ;;  %v797_v22 = vld [vmem:[%s5129_s3 + $0x3d8] sm:$0xff] }
 0x1eb   :  { %2747 = vmatprep.subr.bf16.mxu0 %v2746_v5  ;;  %v2754_v36 = vpack.c.bf16 %v763_v39, %v3878_v40  ;;  %v3915_v41 = vmax.f32 %v3616_v53, %v469_v18  ;;  %v2756_v42 = vpack.c.bf16 %v3895_v26, %v3890_v25  ;;  %v2143_v8 = vrot.slane %v3865_v20, 9 }
 0x1ec   :  { %2777 = vmatpush3.bf16.msra.mxu1 %v2776_v30  ;;  %v496_v44 = vsel %vm460_vm5, %v3166_v17, %v3165_v13  ;;  %v2786_v52 = vpack.c.bf16 %v795_v31, %v794_v16  ;;  %v534_v53 = vrot.slane %v3719_v9, 6  ;;  %v2148_v34 = vrot.slane %v3792_v51, 11  ;;  %v748_v30 = vld [vmem:[%s5129_s3 + $0x250] sm:$0xff] }
 0x1ed   :  { %2749 = vmatpush3.bf16.msra.mxu0 %v2748_v0  ;;  %2779 = vmatprep.subr.bf16.mxu1 %v2778_v21  ;;  %v471_v45 = vsel %vm460_vm5, %v3160_v12, %v3161_v11  ;;  %v3934_v46 = vsel %vm645_vm6, %v525_v43, %v2143_v8  ;;  %v536_v47 = vrot.slane %v3771_v32, 6  ;;  %v2150_v50 = vrot.slane %v3774_v33, 11  ;;  %v749_v0 = vld [vmem:[%s5129_s3 + $0x258] sm:$0xff]  ;;  %v796_v21 = vld [vmem:[%s5129_s3 + $0x3d0] sm:$0xff]  ;;  %v750_v43 = vld [vmem:[%s5129_s3 + $0x260] sm:$0xff] }
 0x1ee   :  { %2751 = vmatprep.subr.bf16.mxu0 %v2750_v29  ;;  %v3945_v57 = vsel %vm645_vm6, %v534_v53, %v2148_v34  ;;  %v533_v58 = vrot.slane %v3710_v62, 6  ;;  %v2147_v59 = vrot.slane %v3865_v20, 11  ;;  %v606_v60 = vrot.slane %v3792_v51, 5  ;;  %v767_v29 = vld [vmem:[%s5129_s3 + $0x2e8] sm:$0xff] }
 0x1ef   :  { %v3960_v5 = vsel %vm645_vm6, %v536_v47, %v2150_v50  ;;  %v535_v6 = vrot.slane %v3789_v7, 6  ;;  %v2149_v4 = vrot.slane %v3915_v41, 11  ;;  %v608_v14 = vrot.slane %v3774_v33, 5  ;;  %v751_v8 = vld [vmem:[%s5129_s3 + $0x268] sm:$0xff] }
 0x1f0   :  { %2781 = vmatpush3.bf16.msra.mxu1 %v2780_v28  ;;  %v3966_v18 = vmax.f32 %v3652_v10, %v471_v45  ;;  %v3978_v40 = vsel %vm645_vm6, %v533_v58, %v2147_v59  ;;  %v3982_v10 = vsel %vm645_vm6, %v3705_v49, %v606_v60  ;;  %v605_v39 = vrot.slane %v3865_v20, 5  ;;  %v766_v28 = vld [vmem:[%s5129_s3 + $0x2e0] sm:$0xff]  ;;  %v783_v45 = vld [vmem:[%s5129_s3 + $0x368] sm:$0xff]  ;;  %v769_v58 = vld [vmem:[%s5129_s3 + $0x2f8] sm:$0xff] }
 0x1f1   :  { %2753 = vmatpush3.bf16.msra.mxu0 %v2752_v37  ;;  %2783 = vmatprep.subr.bf16.mxu1 %v2782_v35  ;;  %v3986_v23 = vmax.f32 %v3661_v19, %v496_v44  ;;  %v2758_v24 = vpack.c.bf16 %v765_v56, %v764_v55  ;;  %v3989_v25 = vsel %vm645_vm6, %v535_v6, %v2149_v4  ;;  %v780_v37 = vld [vmem:[%s5129_s3 + $0x350] sm:$0xff]  ;;  %v781_v35 = vld [vmem:[%s5129_s3 + $0x358] sm:$0xff]  ;;  %v798_v44 = vld [vmem:[%s5129_s3 + $0x3e0] sm:$0xff]  ;;  %v546_v53 = vrot.slane %v3705_v49, 2 }
 0x1f2   :  { %2755 = vmatprep.subr.bf16.mxu0 %v2754_v36  ;;  %v3993_v26 = vsel %vm645_vm6, %v3728_v15, %v608_v14  ;;  %v2788_v19 = vpack.c.bf16 %v779_v3, %v778_v27  ;;  %v2760_v16 = vpack.c.bf16 %v749_v0, %v748_v30  ;;  %v2790_v31 = vpack.c.bf16 %v797_v22, %v796_v21  ;;  %v768_v56 = vld [vmem:[%s5129_s3 + $0x2f0] sm:$0xff]  ;;  %v801_v3 = vld [vmem:[%s5129_s3 + $0x3f8] sm:$0xff]  ;;  %v818_v0 = vld [vmem:[%s5129_s3 + $0x480] sm:$0xff] }
 0x1f3   :  { %v4009_v36 = vsel %vm645_vm6, %v3702_v48, %v605_v39  ;;  %v2152_v34 = vrot.slane %v3966_v18, 7  ;;  %v548_v47 = vrot.slane %v3728_v15, 2  ;;  %v2154_v50 = vrot.slane %v3986_v23, 7  ;;  %v752_v59 = vld [vmem:[%s5129_s3 + $0x270] sm:$0xff]  ;;  %v785_v14 = vld [vmem:[%s5129_s3 + $0x378] sm:$0xff]  ;;  %v819_v39 = vld [vmem:[%s5129_s3 + $0x488] sm:$0xff] }
 0x1f4   :  { %2785 = vmatpush3.bf16.msra.mxu1 %v2784_v38  ;;  %v470_v38 = vsel %vm460_vm5, %v3165_v13, %v3160_v12  ;;  %v607_v13 = vrot.slane %v3915_v41, 5  ;;  %v2762_v12 = vpack.c.bf16 %v767_v29, %v766_v28  ;;  %v472_v55 = vsel %vm460_vm5, %v3161_v11, %v3166_v17  ;;  %v753_v11 = vld [vmem:[%s5129_s3 + $0x278] sm:$0xff]  ;;  %v800_v27 = vld [vmem:[%s5129_s3 + $0x3f0] sm:$0xff]  ;;  %v803_v28 = vld [vmem:[%s5129_s3 + $0x408] sm:$0xff] }
 0x1f5   :  { %2757 = vmatpush3.bf16.msra.mxu0 %v2756_v42  ;;  %2787 = vmatprep.subr.bf16.mxu1 %v2786_v52  ;;  %v799_v42 = vld [vmem:[%s5129_s3 + $0x3e8] sm:$0xff]  ;;  %v782_v52 = vld [vmem:[%s5129_s3 + $0x360] sm:$0xff]  ;;  %v4054_v60 = vsel %vm645_vm6, %v546_v53, %v2152_v34  ;;  %v4061_v61 = vmax.f32 %v3638_v63, %v470_v38  ;;  %v2792_v17 = vpack.c.bf16 %v781_v35, %v780_v37  ;;  %v4078_v4 = vld [vmem:[%s5129_s3 + $0x370] sm:$0xff]  ;;  %v545_v35 = vrot.slane %v3702_v48, 2 }
 0x1f6   :  { %2759 = vmatprep.subr.bf16.mxu0 %v2758_v24  ;;  %v4058_v54 = vsel %vm645_vm6, %v3725_v1, %v607_v13  ;;  %v4073_v30 = vsel %vm645_vm6, %v548_v47, %v2154_v50  ;;  %v2764_v63 = vpack.c.bf16 %v751_v8, %v750_v43  ;;  %v2794_v6 = vpack.c.bf16 %v799_v42, %v798_v44  ;;  %v802_v24 = vld [vmem:[%s5129_s3 + $0x400] sm:$0xff] }
 0x1f7   :  { %v511_v21 = vmax.f32 %v3640_v2, %v472_v55  ;;  %v2766_v22 = vpack.c.bf16 %v769_v58, %v768_v56  ;;  %v2796_v29 = vpack.c.bf16 %v783_v45, %v782_v52  ;;  %v4099_v2 = vld [vmem:[%s5129_s3 + $0x580] sm:$0xff]  ;;  %v2800_v37 = vpack.c.bf16 %v785_v14, %v4078_v4  ;;  %v820_v45 = vld [vmem:[%s5129_s3 + $0x490] sm:$0xff] }
 0x1f8   :  { %2789 = vmatpush3.bf16.msra.mxu1 %v2788_v19  ;;  %v2768_v19 = vpack.c.bf16 %v753_v11, %v752_v59  ;;  %v2151_v38 = vrot.slane %v4061_v61, 7  ;;  %v2802_v43 = vpack.c.bf16 %v819_v39, %v818_v0  ;;  %v2804_v8 = vpack.c.bf16 %v803_v28, %v802_v24  ;;  %v822_v14 = vld [vmem:[%s5129_s3 + $0x4a0] sm:$0xff]  ;;  %v823_v0 = vld [vmem:[%s5129_s3 + $0x4a8] sm:$0xff] }
 0x1f9   :  { %2761 = vmatpush3.bf16.msra.mxu0 %v2760_v16  ;;  %2791 = vmatprep.subr.bf16.mxu1 %v2790_v31  ;;  %v4104_v16 = vld [vmem:[%s5129_s3 + $0x588] sm:$0xff]  ;;  %v2798_v31 = vpack.c.bf16 %v801_v3, %v800_v27  ;;  %v554_v44 = vrot.slane %v3705_v49, 4  ;;  %v2156_v53 = vrot.slane %v3966_v18, 9  ;;  %v2153_v42 = vrot.slane %v511_v21, 7  ;;  %v821_v49 = vld [vmem:[%s5129_s3 + $0x498] sm:$0xff] }
 0x1fa   :  { %2763 = vmatprep.subr.bf16.mxu0 %v2762_v12  ;;  %v2834_v34 = vpack.c.bf16 %v4104_v16, %v4099_v2  ;;  %v4114_v13 = vsel %vm645_vm6, %v545_v35, %v2151_v38  ;;  %v547_v12 = vrot.slane %v3725_v1, 2  ;;  %v2139_v52 = vrot.slane %v3865_v20, 7  ;;  %v805_v3 = vld [vmem:[%s5129_s3 + $0x418] sm:$0xff]  ;;  %v806_v16 = vld [vmem:[%s5129_s3 + $0x420] sm:$0xff]  ;;  %v855_v38 = vld [vmem:[%s5129_s3 + $0x5a8] sm:$0xff] }
 0x1fb   :  { %v4125_v18 = vsel %vm645_vm6, %v554_v44, %v2156_v53  ;;  %v556_v47 = vrot.slane %v3728_v15, 4  ;;  %v2158_v50 = vrot.slane %v3986_v23, 9  ;;  %v2144_v55 = vrot.slane %v3792_v51, 9  ;;  %v834_v15 = vld [vmem:[%s5129_s3 + $0x500] sm:$0xff]  ;;  %v835_v23 = vld [vmem:[%s5129_s3 + $0x508] sm:$0xff]  ;;  %v804_v51 = vld [vmem:[%s5129_s3 + $0x410] sm:$0xff] }
 0x1fc   :  { %2793 = vmatpush3.bf16.msra.mxu1 %v2792_v17  ;;  %v4131_v20 = vsel %vm645_vm6, %v547_v12, %v2153_v42  ;;  %v553_v56 = vrot.slane %v3702_v48, 4  ;;  %v2155_v58 = vrot.slane %v4061_v61, 9  ;;  %v517_v59 = vrot.slane %v3710_v62, 2  ;;  %v837_v2 = vld [vmem:[%s5129_s3 + $0x518] sm:$0xff]  ;;  %v854_v35 = vld [vmem:[%s5129_s3 + $0x5a0] sm:$0xff] }
 0x1fd   :  { %2765 = vmatpush3.bf16.msra.mxu0 %v2764_v63  ;;  %2795 = vmatprep.subr.bf16.mxu1 %v2794_v6  ;;  %v4146_v48 = vsel %vm645_vm6, %v556_v47, %v2158_v50  ;;  %v555_v61 = vrot.slane %v3725_v1, 4  ;;  %v2157_v17 = vrot.slane %v511_v21, 9  ;;  %v526_v62 = vrot.slane %v3719_v9, 4  ;;  %v852_v63 = vld [vmem:[%s5129_s3 + $0x590] sm:$0xff]  ;;  %v853_v6 = vld [vmem:[%s5129_s3 + $0x598] sm:$0xff]  ;;  %v838_v42 = vld [vmem:[%s5129_s3 + $0x520] sm:$0xff] }
 0x1fe   :  { %2767 = vmatprep.subr.bf16.mxu0 %v2766_v22  ;;  %v2141_v11 = vrot.slane %v3915_v41, 7  ;;  %v2806_v27 = vpack.c.bf16 %v821_v49, %v820_v45  ;;  %v4161_v1 = vsel %vm645_vm6, %v553_v56, %v2155_v58  ;;  %v650_v9 = vsel %vm645_vm6, %v517_v59, %v2139_v52  ;;  %v825_v44 = vld [vmem:[%s5129_s3 + $0x4b8] sm:$0xff]  ;;  %v839_v52 = vld [vmem:[%s5129_s3 + $0x528] sm:$0xff]  ;;  %v808_v45 = vld [vmem:[%s5129_s3 + $0x430] sm:$0xff] }
 0x1ff   :  { %v2146_v4 = vrot.slane %v3774_v33, 9  ;;  %v4172_v21 = vsel %vm645_vm6, %v555_v61, %v2157_v17  ;;  %v655_v22 = vsel %vm645_vm6, %v526_v62, %v2144_v55  ;;  %v519_v39 = vrot.slane %v3789_v7, 2  ;;  %v809_v47 = vld [vmem:[%s5129_s3 + $0x438] sm:$0xff]  ;;  %v856_v50 = vld [vmem:[%s5129_s3 + $0x5b0] sm:$0xff]  ;;  %v826_v56 = vld [vmem:[%s5129_s3 + $0x4c0] sm:$0xff] }
 0x200   :  { %2797 = vmatpush3.bf16.msra.mxu1 %v2796_v29  ;;  %v2836_v24 = vpack.c.bf16 %v835_v23, %v834_v15  ;;  %v528_v33 = vrot.slane %v3771_v32, 4  ;;  %v2808_v28 = vpack.c.bf16 %v805_v3, %v804_v51  ;;  %v2838_v29 = vpack.c.bf16 %v853_v6, %v852_v63  ;;  %v807_v32 = vld [vmem:[%s5129_s3 + $0x428] sm:$0xff]  ;;  %v857_v55 = vld [vmem:[%s5129_s3 + $0x5b8] sm:$0xff]  ;;  %v840_v51 = vld [vmem:[%s5129_s3 + $0x530] sm:$0xff] }
 0x201   :  { %2769 = vmatpush3.bf16.msra.mxu0 %v2768_v19  ;;  %2799 = vmatprep.subr.bf16.mxu1 %v2798_v31  ;;  %v836_v19 = vld [vmem:[%s5129_s3 + $0x510] sm:$0xff]  ;;  %v652_v31 = vsel %vm645_vm6, %v519_v39, %v2141_v11  ;;  %v2842_v12 = vpack.c.bf16 %v855_v38, %v854_v35  ;;  %v827_v58 = vld [vmem:[%s5129_s3 + $0x4c8] sm:$0xff]  ;;  %v2844_v59 = vpack.c.bf16 %v839_v52, %v838_v42  ;;  %v841_v61 = vld [vmem:[%s5129_s3 + $0x538] sm:$0xff] }
 0x202   :  { %2803 = vmatprep.subr.bf16.mxu0 %v2802_v43  ;;  %v657_v43 = vsel %vm645_vm6, %v528_v33, %v2146_v4  ;;  %v2840_v53 = vpack.c.bf16 %v837_v2, %v836_v19  ;;  %v2816_v15 = vpack.c.bf16 %v809_v47, %v808_v45  ;;  %v2846_v23 = vpack.c.bf16 %v857_v55, %v856_v50  ;;  %v810_v17 = vld [vmem:[%s5129_s3 + $0x440] sm:$0xff]  ;;  %v811_v11 = vld [vmem:[%s5129_s3 + $0x448] sm:$0xff]  ;;  %v828_v63 = vld [vmem:[%s5129_s3 + $0x4d0] sm:$0xff] }
 0x203   :  { %v2818_v62 = vpack.c.bf16 %v827_v58, %v826_v56  ;;  %v859_v3 = vld [vmem:[%s5129_s3 + $0x5c8] sm:$0xff]  ;;  %v829_v6 = vld [vmem:[%s5129_s3 + $0x4d8] sm:$0xff]  ;;  %v2820_v4 = vpack.c.bf16 %v811_v11, %v810_v17  ;;  %v812_v39 = vld [vmem:[%s5129_s3 + $0x450] sm:$0xff] }
 0x204   :  { %2801 = vmatpush3.bf16.msra.mxu1 %v2800_v37  ;;  %1334 = vmatmul.mubr.f32.vlgmr.msra.gmra.mrb[10].mxu0 %v650_v9  ;;  %v2810_v37 = vpack.c.bf16 %v823_v0, %v822_v14  ;;  %v2848_v9 = vpack.c.bf16 %v841_v61, %v840_v51  ;;  %v842_v0 = vld [vmem:[%s5129_s3 + $0x540] sm:$0xff]  ;;  %v813_v33 = vld [vmem:[%s5129_s3 + $0x458] sm:$0xff]  ;;  %v831_v2 = vld [vmem:[%s5129_s3 + $0x4e8] sm:$0xff] }
 0x205   :  { %2805 = vmatpush3.bf16.msra.mxu0 %v2804_v8  ;;  %1473 = vmatprep.mubr.f32.mxu0 %v655_v22  ;;  %v824_v8 = vld [vmem:[%s5129_s3 + $0x4b0] sm:$0xff]  ;;  %v843_v22 = vld [vmem:[%s5129_s3 + $0x548] sm:$0xff]  ;;  %v830_v19 = vld [vmem:[%s5129_s3 + $0x4e0] sm:$0xff] }
 0x206   :  { %2835 = vmatprep.subr.bf16.mxu1 %v2834_v34  ;;  %2807 = vmatprep.subr.bf16.mxu0 %v2806_v27  ;;  %v2812_v34 = vpack.c.bf16 %v807_v32, %v806_v16  ;;  %v2814_v49 = vpack.c.bf16 %v825_v44, %v824_v8  ;;  %v858_v27 = vld [vmem:[%s5129_s3 + $0x5c0] sm:$0xff]  ;;  %v2852_v16 = vpack.c.bf16 %v843_v22, %v842_v0  ;;  %v844_v32 = vld [vmem:[%s5129_s3 + $0x550] sm:$0xff]  ;;  %v845_v35 = vld [vmem:[%s5129_s3 + $0x558] sm:$0xff] }
 0x207   :  { %1404 = vmatmul.mubr.f32.vlgmr.msra.gmra.mrb[10].mxu1 %v652_v31  ;;  %v2850_v14 = vpack.c.bf16 %v859_v3, %v858_v27  ;;  %v2824_v31 = vpack.c.bf16 %v813_v33, %v812_v39  ;;  %v814_v38 = vld [vmem:[%s5129_s3 + $0x460] sm:$0xff]  ;;  %v815_v8 = vld [vmem:[%s5129_s3 + $0x468] sm:$0xff]  ;;  %v2856_v42 = vpack.c.bf16 %v845_v35, %v844_v32  ;;  %v816_v50 = vld [vmem:[%s5129_s3 + $0x470] sm:$0xff]  ;;  %v527_v32 = vrot.slane %v3789_v7, 4 }
 0x208   :  { %2837 = vmatpush3.bf16.msra.mxu1 %v2836_v24  ;;  %1543 = vmatprep.mubr.f32.mxu1 %v657_v43  ;;  %v2822_v24 = vpack.c.bf16 %v829_v6, %v828_v63  ;;  %v2826_v43 = vpack.c.bf16 %v831_v2, %v830_v19  ;;  %v862_v44 = vld [vmem:[%s5129_s3 + $0x5e0] sm:$0xff]  ;;  %v2828_v52 = vpack.c.bf16 %v815_v8, %v814_v38  ;;  %v847_v47 = vld [vmem:[%s5129_s3 + $0x568] sm:$0xff]  ;;  %v817_v56 = vld [vmem:[%s5129_s3 + $0x478] sm:$0xff] }
 0x209   :  { %2809 = vmatpush3.bf16.msra.mxu0 %v2808_v28  ;;  %2839 = vmatprep.subr.bf16.mxu1 %v2838_v29  ;;  %v860_v28 = vld [vmem:[%s5129_s3 + $0x5d0] sm:$0xff]  ;;  %v861_v29 = vld [vmem:[%s5129_s3 + $0x5d8] sm:$0xff]  ;;  %v2832_v61 = vpack.c.bf16 %v817_v56, %v816_v50  ;;  %v866_v3 = vld [vmem:[%s5129_s3 + $0x600] sm:$0xff] }
 0x20a   :  { %2811 = vmatprep.subr.bf16.mxu0 %v2810_v37  ;;  %v2854_v37 = vpack.c.bf16 %v861_v29, %v860_v28  ;;  %v864_v58 = vld [vmem:[%s5129_s3 + $0x5f0] sm:$0xff]  ;;  %v849_v11 = vld [vmem:[%s5129_s3 + $0x578] sm:$0xff]  ;;  %v867_v63 = vld [vmem:[%s5129_s3 + $0x608] sm:$0xff]  ;;  %v2145_v28 = vrot.slane %v3915_v41, 9 }
 0x20b   :  { %v914_v6 = vld [vmem:[%s5129_s3 + $0x780] sm:$0xff]  ;;  %v2868_v22 = vpack.c.bf16 %v867_v63, %v866_v3  ;;  %v868_v33 = vld [vmem:[%s5129_s3 + $0x610] sm:$0xff]  ;;  %v869_v2 = vld [vmem:[%s5129_s3 + $0x618] sm:$0xff] }
 0x20c   :  { %2841 = vmatpush3.bf16.msra.mxu1 %v2840_v53  ;;  %v863_v53 = vld [vmem:[%s5129_s3 + $0x5e8] sm:$0xff]  ;;  %v898_v39 = vld [vmem:[%s5129_s3 + $0x700] sm:$0xff]  ;;  %v2872_v38 = vpack.c.bf16 %v869_v2, %v868_v33  ;;  %v900_v8 = vld [vmem:[%s5129_s3 + $0x710] sm:$0xff]  ;;  %v656_v7 = vsel %vm645_vm6, %v527_v32, %v2145_v28 }
 0x20d   :  { %2813 = vmatpush3.bf16.msra.mxu0 %v2812_v34  ;;  %2843 = vmatprep.subr.bf16.mxu1 %v2842_v12  ;;  %v832_v34 = vld [vmem:[%s5129_s3 + $0x4f0] sm:$0xff]  ;;  %v833_v12 = vld [vmem:[%s5129_s3 + $0x4f8] sm:$0xff]  ;;  %v2858_v45 = vpack.c.bf16 %v863_v53, %v862_v44  ;;  %v887_v41 = vld [vmem:[%s5129_s3 + $0x6a8] sm:$0xff] }
 0x20e   :  { %2815 = vmatprep.subr.bf16.mxu0 %v2814_v49  ;;  %v846_v49 = vld [vmem:[%s5129_s3 + $0x560] sm:$0xff]  ;;  %v2830_v55 = vpack.c.bf16 %v833_v12, %v832_v34  ;;  %v901_v44 = vld [vmem:[%s5129_s3 + $0x718] sm:$0xff]  ;;  %v919_v12 = vld [vmem:[%s5129_s3 + $0x7a8] sm:$0xff] }
 0x20f   :  { %v2860_v51 = vpack.c.bf16 %v847_v47, %v846_v49  ;;  %v918_v34 = vld [vmem:[%s5129_s3 + $0x7a0] sm:$0xff]  ;;  %v872_v56 = vld [vmem:[%s5129_s3 + $0x630] sm:$0xff]  ;;  %v907_v28 = vld [vmem:[%s5129_s3 + $0x748] sm:$0xff] }
 0x210   :  { %2845 = vmatpush3.bf16.msra.mxu1 %v2844_v59  ;;  %v865_v59 = vld [vmem:[%s5129_s3 + $0x5f8] sm:$0xff]  ;;  %v2906_v47 = vpack.c.bf16 %v919_v12, %v918_v34  ;;  %v902_v50 = vld [vmem:[%s5129_s3 + $0x720] sm:$0xff]  ;;  %v896_v34 = vld [vmem:[%s5129_s3 + $0x6f0] sm:$0xff] }
 0x211   :  { %2817 = vmatpush3.bf16.msra.mxu0 %v2816_v15  ;;  %2847 = vmatprep.subr.bf16.mxu1 %v2846_v23  ;;  %v882_v15 = vld [vmem:[%s5129_s3 + $0x680] sm:$0xff]  ;;  %v883_v23 = vld [vmem:[%s5129_s3 + $0x688] sm:$0xff]  ;;  %v2862_v17 = vpack.c.bf16 %v865_v59, %v864_v58  ;;  %v920_v59 = vld [vmem:[%s5129_s3 + $0x7b0] sm:$0xff] }
 0x212   :  { %2819 = vmatprep.subr.bf16.mxu0 %v2818_v62  ;;  %v848_v62 = vld [vmem:[%s5129_s3 + $0x570] sm:$0xff]  ;;  %v2866_v27 = vpack.c.bf16 %v883_v23, %v882_v15  ;;  %v921_v15 = vld [vmem:[%s5129_s3 + $0x7b8] sm:$0xff]  ;;  %v890_v23 = vld [vmem:[%s5129_s3 + $0x6c0] sm:$0xff] }
 0x213   :  { %v2864_v0 = vpack.c.bf16 %v849_v11, %v848_v62  ;;  %v2910_v62 = vpack.c.bf16 %v921_v15, %v920_v59  ;;  %v904_v11 = vld [vmem:[%s5129_s3 + $0x730] sm:$0xff]  ;;  %v874_v3 = vld [vmem:[%s5129_s3 + $0x640] sm:$0xff]  ;;  %v877_v2 = vld [vmem:[%s5129_s3 + $0x658] sm:$0xff] }
 0x214   :  { %2849 = vmatpush3.bf16.msra.mxu1 %v2848_v9  ;;  %v915_v9 = vld [vmem:[%s5129_s3 + $0x788] sm:$0xff]  ;;  %v906_v33 = vld [vmem:[%s5129_s3 + $0x740] sm:$0xff]  ;;  %v897_v12 = vld [vmem:[%s5129_s3 + $0x6f8] sm:$0xff] }
 0x215   :  { %2821 = vmatpush3.bf16.msra.mxu0 %v2820_v4  ;;  %2851 = vmatprep.subr.bf16.mxu1 %v2850_v14  ;;  %v884_v4 = vld [vmem:[%s5129_s3 + $0x690] sm:$0xff]  ;;  %v885_v14 = vld [vmem:[%s5129_s3 + $0x698] sm:$0xff]  ;;  %v2898_v29 = vpack.c.bf16 %v915_v9, %v914_v6  ;;  %v875_v6 = vld [vmem:[%s5129_s3 + $0x648] sm:$0xff]  ;;  %v2916_v32 = vpack.c.bf16 %v907_v28, %v906_v33 }
 0x216   :  { %2823 = vmatprep.subr.bf16.mxu0 %v2822_v24  ;;  %v899_v24 = vld [vmem:[%s5129_s3 + $0x708] sm:$0xff]  ;;  %v2870_v19 = vpack.c.bf16 %v885_v14, %v884_v4  ;;  %v922_v9 = vld [vmem:[%s5129_s3 + $0x7c0] sm:$0xff]  ;;  %v892_v14 = vld [vmem:[%s5129_s3 + $0x6d0] sm:$0xff] }
 0x217   :  { %v2900_v35 = vpack.c.bf16 %v899_v24, %v898_v39  ;;  %v923_v4 = vld [vmem:[%s5129_s3 + $0x7c8] sm:$0xff]  ;;  %v2884_v39 = vpack.c.bf16 %v875_v6, %v874_v3  ;;  %v946_v59 = vld [vmem:[%s5129_s3 + $0x880] sm:$0xff] }
 0x218   :  { %2853 = vmatpush3.bf16.msra.mxu1 %v2852_v16  ;;  %v916_v16 = vld [vmem:[%s5129_s3 + $0x790] sm:$0xff]  ;;  %v2914_v24 = vpack.c.bf16 %v923_v4, %v922_v9  ;;  %v947_v15 = vld [vmem:[%s5129_s3 + $0x888] sm:$0xff]  ;;  %v949_v4 = vld [vmem:[%s5129_s3 + $0x898] sm:$0xff] }
 0x219   :  { %2825 = vmatpush3.bf16.msra.mxu0 %v2824_v31  ;;  %2855 = vmatprep.subr.bf16.mxu1 %v2854_v37  ;;  %v917_v31 = vld [vmem:[%s5129_s3 + $0x798] sm:$0xff]  ;;  %v886_v37 = vld [vmem:[%s5129_s3 + $0x6a0] sm:$0xff]  ;;  %v931_v3 = vld [vmem:[%s5129_s3 + $0x808] sm:$0xff] }
 0x21a   :  { %2827 = vmatprep.subr.bf16.mxu0 %v2826_v43  ;;  %v2902_v43 = vpack.c.bf16 %v917_v31, %v916_v16  ;;  %v2874_v53 = vpack.c.bf16 %v887_v41, %v886_v37  ;;  %v924_v16 = vld [vmem:[%s5129_s3 + $0x7d0] sm:$0xff]  ;;  %v925_v31 = vld [vmem:[%s5129_s3 + $0x7d8] sm:$0xff]  ;;  %v894_v37 = vld [vmem:[%s5129_s3 + $0x6e0] sm:$0xff] }
 0x21b   :  { %v895_v41 = vld [vmem:[%s5129_s3 + $0x6e8] sm:$0xff]  ;;  %v948_v9 = vld [vmem:[%s5129_s3 + $0x890] sm:$0xff] }
 0x21c   :  { %2857 = vmatpush3.bf16.msra.mxu1 %v2856_v42  ;;  %v888_v42 = vld [vmem:[%s5129_s3 + $0x6b0] sm:$0xff]  ;;  %v979_v6 = vld [vmem:[%s5129_s3 + $0x988] sm:$0xff]  ;;  %v2934_v28 = vpack.c.bf16 %v949_v4, %v948_v9 }
 0x21d   :  { %2829 = vmatpush3.bf16.msra.mxu0 %v2828_v52  ;;  %2859 = vmatprep.subr.bf16.mxu1 %v2858_v45  ;;  %v889_v52 = vld [vmem:[%s5129_s3 + $0x6b8] sm:$0xff]  ;;  %v2904_v45 = vpack.c.bf16 %v901_v44, %v900_v8  ;;  %v878_v44 = vld [vmem:[%s5129_s3 + $0x660] sm:$0xff]  ;;  %v971_v9 = vld [vmem:[%s5129_s3 + $0x948] sm:$0xff] }
 0x21e   :  { %2831 = vmatprep.subr.bf16.mxu0 %v2830_v55  ;;  %v903_v55 = vld [vmem:[%s5129_s3 + $0x728] sm:$0xff]  ;;  %v2878_v58 = vpack.c.bf16 %v889_v52, %v888_v42  ;;  %v909_v8 = vld [vmem:[%s5129_s3 + $0x758] sm:$0xff]  ;;  %v940_v4 = vld [vmem:[%s5129_s3 + $0x850] sm:$0xff] }
 0x220   :  { %2861 = vmatpush3.bf16.msra.mxu1 %v2860_v51  ;;  %v891_v51 = vld [vmem:[%s5129_s3 + $0x6c8] sm:$0xff] }
 0x221   :  { %2833 = vmatpush3.bf16.msra.mxu0 %v2832_v61  ;;  %2863 = vmatprep.subr.bf16.mxu1 %v2862_v17  ;;  %v2908_v61 = vpack.c.bf16 %v903_v55, %v902_v50  ;;  %v2882_v63 = vpack.c.bf16 %v891_v51, %v890_v23  ;;  %v880_v50 = vld [vmem:[%s5129_s3 + $0x670] sm:$0xff]  ;;  %v2894_v55 = vpack.c.bf16 %v897_v12, %v896_v34  ;;  %v967_v12 = vld [vmem:[%s5129_s3 + $0x928] sm:$0xff] }
 0x222   :  { %2867 = vmatprep.subr.bf16.mxu0 %v2866_v27  ;;  %v905_v27 = vld [vmem:[%s5129_s3 + $0x738] sm:$0xff] }
 0x224   :  { %2865 = vmatpush3.bf16.msra.mxu1 %v2864_v0  ;;  %1474 = vmatmul.mubr.f32.vlgmr.msra.gmra.mrb[12].mxu0 %v3934_v46  ;;  %v870_v46 = vld [vmem:[%s5129_s3 + $0x620] sm:$0xff]  ;;  %v893_v0 = vld [vmem:[%s5129_s3 + $0x6d8] sm:$0xff] }
 0x225   :  { %2869 = vmatpush3.bf16.msra.mxu0 %v2868_v22  ;;  %1613 = vmatprep.mubr.f32.mxu0 %v3945_v57  ;;  %v871_v57 = vld [vmem:[%s5129_s3 + $0x628] sm:$0xff]  ;;  %v2912_v22 = vpack.c.bf16 %v905_v27, %v904_v11  ;;  %v2930_v11 = vpack.c.bf16 %v947_v15, %v946_v59  ;;  %v930_v27 = vld [vmem:[%s5129_s3 + $0x800] sm:$0xff]  ;;  %v969_v59 = vld [vmem:[%s5129_s3 + $0x938] sm:$0xff] }
 0x226   :  { %2899 = vmatprep.subr.bf16.mxu1 %v2898_v29  ;;  %2871 = vmatprep.subr.bf16.mxu0 %v2870_v19  ;;  %v2876_v49 = vpack.c.bf16 %v871_v57, %v870_v46  ;;  %v876_v29 = vld [vmem:[%s5129_s3 + $0x650] sm:$0xff]  ;;  %v2886_v19 = vpack.c.bf16 %v893_v0, %v892_v14  ;;  %v2890_v46 = vpack.c.bf16 %v895_v41, %v894_v37  ;;  %v927_v57 = vld [vmem:[%s5129_s3 + $0x7e8] sm:$0xff]  ;;  %v938_v15 = vld [vmem:[%s5129_s3 + $0x840] sm:$0xff] }
 0x227   :  { %1544 = vmatmul.mubr.f32.vlgmr.msra.gmra.mrb[12].mxu1 %v656_v7  ;;  %v879_v7 = vld [vmem:[%s5129_s3 + $0x668] sm:$0xff]  ;;  %v2932_v0 = vpack.c.bf16 %v931_v3, %v930_v27 }
 0x228   :  { %2901 = vmatpush3.bf16.msra.mxu1 %v2900_v35  ;;  %1683 = vmatprep.mubr.f32.mxu1 %v3960_v5  ;;  %v873_v5 = vld [vmem:[%s5129_s3 + $0x638] sm:$0xff]  ;;  %v2888_v35 = vpack.c.bf16 %v877_v2, %v876_v29  ;;  %v2892_v52 = vpack.c.bf16 %v879_v7, %v878_v44  ;;  %v983_v44 = vld [vmem:[%s5129_s3 + $0x9a8] sm:$0xff] }
 0x229   :  { %2873 = vmatpush3.bf16.msra.mxu0 %v2872_v38  ;;  %2903 = vmatprep.subr.bf16.mxu1 %v2902_v43  ;;  %v2880_v17 = vpack.c.bf16 %v873_v5, %v872_v56  ;;  %v2918_v38 = vpack.c.bf16 %v925_v31, %v924_v16  ;;  %v908_v43 = vld [vmem:[%s5129_s3 + $0x750] sm:$0xff]  ;;  %v881_v56 = vld [vmem:[%s5129_s3 + $0x678] sm:$0xff]  ;;  %v950_v16 = vld [vmem:[%s5129_s3 + $0x8a0] sm:$0xff] }
 0x22a   :  { %2875 = vmatprep.subr.bf16.mxu0 %v2874_v53  ;;  %v926_v53 = vld [vmem:[%s5129_s3 + $0x7e0] sm:$0xff]  ;;  %v2920_v42 = vpack.c.bf16 %v909_v8, %v908_v43  ;;  %v929_v5 = vld [vmem:[%s5129_s3 + $0x7f8] sm:$0xff]  ;;  %v2896_v51 = vpack.c.bf16 %v881_v56, %v880_v50  ;;  %v951_v31 = vld [vmem:[%s5129_s3 + $0x8a8] sm:$0xff] }
 0x22b   :  { %v933_v29 = vld [vmem:[%s5129_s3 + $0x818] sm:$0xff]  ;;  %v934_v43 = vld [vmem:[%s5129_s3 + $0x820] sm:$0xff]  ;;  %v955_v50 = vld [vmem:[%s5129_s3 + $0x8c8] sm:$0xff] }
 0x22c   :  { %2905 = vmatpush3.bf16.msra.mxu1 %v2904_v45  ;;  %v2922_v45 = vpack.c.bf16 %v927_v57, %v926_v53  ;;  %v981_v2 = vld [vmem:[%s5129_s3 + $0x998] sm:$0xff]  ;;  %v982_v8 = vld [vmem:[%s5129_s3 + $0x9a0] sm:$0xff] }
 0x22d   :  { %2877 = vmatpush3.bf16.msra.mxu0 %v2876_v49  ;;  %2907 = vmatprep.subr.bf16.mxu1 %v2906_v47  ;;  %v910_v49 = vld [vmem:[%s5129_s3 + $0x760] sm:$0xff]  ;;  %v911_v47 = vld [vmem:[%s5129_s3 + $0x768] sm:$0xff]  ;;  %v953_v7 = vld [vmem:[%s5129_s3 + $0x8b8] sm:$0xff]  ;;  %v2970_v34 = vpack.c.bf16 %v983_v44, %v982_v8 }
 0x22e   :  { %2879 = vmatprep.subr.bf16.mxu0 %v2878_v58  ;;  %v928_v58 = vld [vmem:[%s5129_s3 + $0x7f0] sm:$0xff]  ;;  %v2924_v23 = vpack.c.bf16 %v911_v47, %v910_v49  ;;  %v985_v49 = vld [vmem:[%s5129_s3 + $0x9b8] sm:$0xff]  ;;  %v954_v47 = vld [vmem:[%s5129_s3 + $0x8c0] sm:$0xff] }
 0x22f   :  { %v974_v44 = vld [vmem:[%s5129_s3 + $0x960] sm:$0xff] }
 0x230   :  { %2909 = vmatpush3.bf16.msra.mxu1 %v2908_v61  ;;  %v2926_v61 = vpack.c.bf16 %v929_v5, %v928_v58  ;;  %v968_v5 = vld [vmem:[%s5129_s3 + $0x930] sm:$0xff] }
 0x231   :  { %2881 = vmatpush3.bf16.msra.mxu0 %v2880_v17  ;;  %2911 = vmatprep.subr.bf16.mxu1 %v2910_v62  ;;  %v912_v17 = vld [vmem:[%s5129_s3 + $0x770] sm:$0xff]  ;;  %v913_v62 = vld [vmem:[%s5129_s3 + $0x778] sm:$0xff]  ;;  %v2976_v27 = vpack.c.bf16 %v969_v59, %v968_v5  ;;  %v1043_v5 = vld [vmem:[%s5129_s3 + $0xb88] sm:$0xff] }
 0x232   :  { %2883 = vmatprep.subr.bf16.mxu0 %v2882_v63  ;;  %v978_v63 = vld [vmem:[%s5129_s3 + $0x980] sm:$0xff]  ;;  %v2928_v14 = vpack.c.bf16 %v913_v62, %v912_v17  ;;  %v987_v17 = vld [vmem:[%s5129_s3 + $0x9c8] sm:$0xff]  ;;  %v956_v62 = vld [vmem:[%s5129_s3 + $0x8d0] sm:$0xff] }
 0x233   :  { %v2962_v33 = vpack.c.bf16 %v979_v6, %v978_v63  ;;  %v970_v6 = vld [vmem:[%s5129_s3 + $0x940] sm:$0xff]  ;;  %v1012_v59 = vld [vmem:[%s5129_s3 + $0xa90] sm:$0xff] }
 0x234   :  { %2913 = vmatpush3.bf16.msra.mxu1 %v2912_v22  ;;  %v962_v22 = vld [vmem:[%s5129_s3 + $0x900] sm:$0xff] }
 0x235   :  { %2885 = vmatpush3.bf16.msra.mxu0 %v2884_v39  ;;  %2915 = vmatprep.subr.bf16.mxu1 %v2914_v24  ;;  %v963_v39 = vld [vmem:[%s5129_s3 + $0x908] sm:$0xff]  ;;  %v932_v24 = vld [vmem:[%s5129_s3 + $0x810] sm:$0xff] }
 0x236   :  { %2887 = vmatprep.subr.bf16.mxu0 %v2886_v19  ;;  %v980_v19 = vld [vmem:[%s5129_s3 + $0x990] sm:$0xff]  ;;  %v2964_v37 = vpack.c.bf16 %v963_v39, %v962_v22  ;;  %v2936_v41 = vpack.c.bf16 %v933_v29, %v932_v24  ;;  %v989_v39 = vld [vmem:[%s5129_s3 + $0x9d8] sm:$0xff]  ;;  %v958_v24 = vld [vmem:[%s5129_s3 + $0x8e0] sm:$0xff] }
 0x237   :  { %v988_v22 = vld [vmem:[%s5129_s3 + $0x9d0] sm:$0xff] }
 0x238   :  { %2917 = vmatpush3.bf16.msra.mxu1 %v2916_v32  ;;  %v2966_v32 = vpack.c.bf16 %v981_v2, %v980_v19  ;;  %v2982_v19 = vpack.c.bf16 %v989_v39, %v988_v22  ;;  %v972_v2 = vld [vmem:[%s5129_s3 + $0x950] sm:$0xff] }
 0x239   :  { %2889 = vmatpush3.bf16.msra.mxu0 %v2888_v35  ;;  %2919 = vmatprep.subr.bf16.mxu1 %v2918_v38  ;;  %v964_v35 = vld [vmem:[%s5129_s3 + $0x910] sm:$0xff]  ;;  %v965_v38 = vld [vmem:[%s5129_s3 + $0x918] sm:$0xff] }
 0x23a   :  { %2891 = vmatprep.subr.bf16.mxu0 %v2890_v46  ;;  %v952_v46 = vld [vmem:[%s5129_s3 + $0x8b0] sm:$0xff]  ;;  %v2968_v53 = vpack.c.bf16 %v965_v38, %v964_v35  ;;  %v991_v35 = vld [vmem:[%s5129_s3 + $0x9e8] sm:$0xff] }
 0x23b   :  { %v960_v38 = vld [vmem:[%s5129_s3 + $0x8f0] sm:$0xff] }
 0x23c   :  { %2921 = vmatpush3.bf16.msra.mxu1 %v2920_v42  ;;  %v936_v42 = vld [vmem:[%s5129_s3 + $0x830] sm:$0xff] }
 0x23d   :  { %2893 = vmatpush3.bf16.msra.mxu0 %v2892_v52  ;;  %2923 = vmatprep.subr.bf16.mxu1 %v2922_v45  ;;  %v2942_v52 = vpack.c.bf16 %v953_v7, %v952_v46  ;;  %v984_v45 = vld [vmem:[%s5129_s3 + $0x9b0] sm:$0xff]  ;;  %v975_v46 = vld [vmem:[%s5129_s3 + $0x968] sm:$0xff] }
 0x23e   :  { %2895 = vmatprep.subr.bf16.mxu0 %v2894_v55  ;;  %v2974_v58 = vpack.c.bf16 %v985_v49, %v984_v45  ;;  %v944_v7 = vld [vmem:[%s5129_s3 + $0x870] sm:$0xff] }
 0x23f   :  { %v976_v49 = vld [vmem:[%s5129_s3 + $0x970] sm:$0xff] }
 0x240   :  { %2925 = vmatpush3.bf16.msra.mxu1 %v2924_v23  ;;  %v2946_v23 = vpack.c.bf16 %v955_v50, %v954_v47  ;;  %v977_v47 = vld [vmem:[%s5129_s3 + $0x978] sm:$0xff]  ;;  %v1028_v39 = vld [vmem:[%s5129_s3 + $0xb10] sm:$0xff] }
 0x241   :  { %2897 = vmatpush3.bf16.msra.mxu0 %v2896_v51  ;;  %2927 = vmatprep.subr.bf16.mxu1 %v2926_v61  ;;  %v939_v51 = vld [vmem:[%s5129_s3 + $0x848] sm:$0xff]  ;;  %v986_v61 = vld [vmem:[%s5129_s3 + $0x9c0] sm:$0xff] }
 0x242   :  { %2931 = vmatprep.subr.bf16.mxu0 %v2930_v11  ;;  %v957_v11 = vld [vmem:[%s5129_s3 + $0x8d8] sm:$0xff]  ;;  %v2948_v3 = vpack.c.bf16 %v939_v51, %v938_v15  ;;  %v2978_v63 = vpack.c.bf16 %v987_v17, %v986_v61  ;;  %v1026_v61 = vld [vmem:[%s5129_s3 + $0xb00] sm:$0xff]  ;;  %v1027_v17 = vld [vmem:[%s5129_s3 + $0xb08] sm:$0xff] }
 0x243   :  { %v1013_v15 = vld [vmem:[%s5129_s3 + $0xa98] sm:$0xff] }
 0x244   :  { %2929 = vmatpush3.bf16.msra.mxu1 %v2928_v14  ;;  %1614 = vmatmul.mubr.f32.vlgmr.msra.gmra.mrb[14].mxu0 %v3978_v40  ;;  %v2938_v40 = vpack.c.bf16 %v951_v31, %v950_v16  ;;  %v2950_v14 = vpack.c.bf16 %v957_v11, %v956_v62  ;;  %v973_v16 = vld [vmem:[%s5129_s3 + $0x958] sm:$0xff]  ;;  %v942_v31 = vld [vmem:[%s5129_s3 + $0x860] sm:$0xff]  ;;  %v996_v62 = vld [vmem:[%s5129_s3 + $0xa10] sm:$0xff] }
 0x245   :  { %2933 = vmatpush3.bf16.msra.mxu0 %v2932_v0  ;;  %1753 = vmatprep.mubr.f32.mxu0 %v3982_v10  ;;  %v935_v10 = vld [vmem:[%s5129_s3 + $0x828] sm:$0xff]  ;;  %v941_v0 = vld [vmem:[%s5129_s3 + $0x858] sm:$0xff] }
 0x246   :  { %2963 = vmatprep.subr.bf16.mxu1 %v2962_v33  ;;  %2935 = vmatprep.subr.bf16.mxu0 %v2934_v28  ;;  %v2940_v57 = vpack.c.bf16 %v935_v10, %v934_v43  ;;  %v959_v33 = vld [vmem:[%s5129_s3 + $0x8e8] sm:$0xff]  ;;  %v2980_v28 = vpack.c.bf16 %v971_v9, %v970_v6  ;;  %v2952_v29 = vpack.c.bf16 %v941_v0, %v940_v4  ;;  %v961_v43 = vld [vmem:[%s5129_s3 + $0x8f8] sm:$0xff]  ;;  %v1014_v9 = vld [vmem:[%s5129_s3 + $0xaa0] sm:$0xff] }
 0x247   :  { %1684 = vmatmul.mubr.f32.vlgmr.msra.gmra.mrb[14].mxu1 %v3989_v25  ;;  %v966_v25 = vld [vmem:[%s5129_s3 + $0x920] sm:$0xff]  ;;  %v1045_v6 = vld [vmem:[%s5129_s3 + $0xb98] sm:$0xff]  ;;  %v1015_v4 = vld [vmem:[%s5129_s3 + $0xaa8] sm:$0xff] }
 0x248   :  { %2965 = vmatpush3.bf16.msra.mxu1 %v2964_v37  ;;  %1823 = vmatprep.mubr.f32.mxu1 %v3993_v26  ;;  %v937_v26 = vld [vmem:[%s5129_s3 + $0x838] sm:$0xff]  ;;  %v2972_v55 = vpack.c.bf16 %v967_v12, %v966_v25  ;;  %v2954_v37 = vpack.c.bf16 %v959_v33, %v958_v24  ;;  %v1010_v12 = vld [vmem:[%s5129_s3 + $0xa80] sm:$0xff] }
 0x249   :  { %2937 = vmatpush3.bf16.msra.mxu0 %v2936_v41  ;;  %2967 = vmatprep.subr.bf16.mxu1 %v2966_v32  ;;  %v2944_v56 = vpack.c.bf16 %v937_v26, %v936_v42  ;;  %v943_v41 = vld [vmem:[%s5129_s3 + $0x868] sm:$0xff]  ;;  %v990_v32 = vld [vmem:[%s5129_s3 + $0x9e0] sm:$0xff]  ;;  %v993_v25 = vld [vmem:[%s5129_s3 + $0x9f8] sm:$0xff] }
 0x24a   :  { %2939 = vmatprep.subr.bf16.mxu0 %v2938_v40  ;;  %v2984_v40 = vpack.c.bf16 %v973_v16, %v972_v2  ;;  %v2956_v10 = vpack.c.bf16 %v943_v41, %v942_v31  ;;  %v2986_v8 = vpack.c.bf16 %v991_v35, %v990_v32  ;;  %v1011_v42 = vld [vmem:[%s5129_s3 + $0xa88] sm:$0xff]  ;;  %v1029_v24 = vld [vmem:[%s5129_s3 + $0xb18] sm:$0xff]  ;;  %v998_v33 = vld [vmem:[%s5129_s3 + $0xa20] sm:$0xff] }
 0x24b   :  { %v2994_v50 = vpack.c.bf16 %v1011_v42, %v1010_v12  ;;  %v1017_v2 = vld [vmem:[%s5129_s3 + $0xab8] sm:$0xff]  ;;  %v3032_v16 = vpack.c.bf16 %v1029_v24, %v1028_v39  ;;  %v1031_v41 = vld [vmem:[%s5129_s3 + $0xb28] sm:$0xff]  ;;  %v1000_v32 = vld [vmem:[%s5129_s3 + $0xa30] sm:$0xff] }
 0x24c   :  { %2969 = vmatpush3.bf16.msra.mxu1 %v2968_v53  ;;  %v2958_v53 = vpack.c.bf16 %v961_v43, %v960_v38  ;;  %v1048_v38 = vld [vmem:[%s5129_s3 + $0xbb0] sm:$0xff]  ;;  %v1049_v43 = vld [vmem:[%s5129_s3 + $0xbb8] sm:$0xff]  ;;  %v1050_v12 = vld [vmem:[%s5129_s3 + $0xbc0] sm:$0xff] }
 0x24d   :  { %2941 = vmatpush3.bf16.msra.mxu0 %v2940_v57  ;;  %2971 = vmatprep.subr.bf16.mxu1 %v2970_v34  ;;  %v945_v57 = vld [vmem:[%s5129_s3 + $0x878] sm:$0xff]  ;;  %v992_v34 = vld [vmem:[%s5129_s3 + $0x9f0] sm:$0xff]  ;;  %v1051_v42 = vld [vmem:[%s5129_s3 + $0xbc8] sm:$0xff] }
 0x24e   :  { %2943 = vmatprep.subr.bf16.mxu0 %v2942_v52  ;;  %v2988_v52 = vpack.c.bf16 %v975_v46, %v974_v44  ;;  %v2960_v26 = vpack.c.bf16 %v945_v57, %v944_v7  ;;  %v2990_v45 = vpack.c.bf16 %v993_v25, %v992_v34  ;;  %v3038_v46 = vpack.c.bf16 %v1049_v43, %v1048_v38  ;;  %v1032_v7 = vld [vmem:[%s5129_s3 + $0xb30] sm:$0xff]  ;;  %v1002_v57 = vld [vmem:[%s5129_s3 + $0xa40] sm:$0xff]  ;;  %v1003_v25 = vld [vmem:[%s5129_s3 + $0xa48] sm:$0xff] }
 0x24f   :  { %v1058_v38 = vld [vmem:[%s5129_s3 + $0xc00] sm:$0xff]  ;;  %v1059_v43 = vld [vmem:[%s5129_s3 + $0xc08] sm:$0xff] }
 0x250   :  { %2973 = vmatpush3.bf16.msra.mxu1 %v2972_v55  ;;  %v994_v55 = vld [vmem:[%s5129_s3 + $0xa00] sm:$0xff] }
 0x251   :  { %2945 = vmatpush3.bf16.msra.mxu0 %v2944_v56  ;;  %2975 = vmatprep.subr.bf16.mxu1 %v2974_v58  ;;  %v995_v56 = vld [vmem:[%s5129_s3 + $0xa08] sm:$0xff]  ;;  %v1042_v58 = vld [vmem:[%s5129_s3 + $0xb80] sm:$0xff] }
 0x252   :  { %2947 = vmatprep.subr.bf16.mxu0 %v2946_v23  ;;  %v2992_v23 = vpack.c.bf16 %v977_v47, %v976_v49  ;;  %v2996_v51 = vpack.c.bf16 %v995_v56, %v994_v55  ;;  %v3026_v11 = vpack.c.bf16 %v1043_v5, %v1042_v58  ;;  %v3012_v49 = vpack.c.bf16 %v1003_v25, %v1002_v57  ;;  %v1035_v55 = vld [vmem:[%s5129_s3 + $0xb48] sm:$0xff]  ;;  %v1004_v56 = vld [vmem:[%s5129_s3 + $0xa50] sm:$0xff]  ;;  %v1005_v5 = vld [vmem:[%s5129_s3 + $0xa58] sm:$0xff] }
 0x253   :  { %v3042_v47 = vpack.c.bf16 %v1051_v42, %v1050_v12  ;;  %v1091_v57 = vld [vmem:[%s5129_s3 + $0xd08] sm:$0xff]  ;;  %v1061_v42 = vld [vmem:[%s5129_s3 + $0xc18] sm:$0xff] }
 0x254   :  { %2977 = vmatpush3.bf16.msra.mxu1 %v2976_v27  ;;  %v2998_v27 = vpack.c.bf16 %v1013_v15, %v1012_v59  ;;  %v1052_v59 = vld [vmem:[%s5129_s3 + $0xbd0] sm:$0xff]  ;;  %v1053_v15 = vld [vmem:[%s5129_s3 + $0xbd8] sm:$0xff] }
 0x255   :  { %2949 = vmatpush3.bf16.msra.mxu0 %v2948_v3  ;;  %2979 = vmatprep.subr.bf16.mxu1 %v2978_v63  ;;  %v997_v3 = vld [vmem:[%s5129_s3 + $0xa18] sm:$0xff]  ;;  %v1044_v63 = vld [vmem:[%s5129_s3 + $0xb90] sm:$0xff] }
 0x256   :  { %2951 = vmatprep.subr.bf16.mxu0 %v2950_v14  ;;  %v3028_v14 = vpack.c.bf16 %v1027_v17, %v1026_v61  ;;  %v3000_v0 = vpack.c.bf16 %v997_v3, %v996_v62  ;;  %v3030_v22 = vpack.c.bf16 %v1045_v6, %v1044_v63  ;;  %v3016_v17 = vpack.c.bf16 %v1005_v5, %v1004_v56  ;;  %v1006_v3 = vld [vmem:[%s5129_s3 + $0xa60] sm:$0xff]  ;;  %v1007_v6 = vld [vmem:[%s5129_s3 + $0xa68] sm:$0xff]  ;;  %v1092_v56 = vld [vmem:[%s5129_s3 + $0xd10] sm:$0xff] }
 0x257   :  { %v3046_v62 = vpack.c.bf16 %v1053_v15, %v1052_v59  ;;  %v3020_v39 = vpack.c.bf16 %v1007_v6, %v1006_v3  ;;  %v1062_v5 = vld [vmem:[%s5129_s3 + $0xc20] sm:$0xff]  ;;  %v1111_v15 = vld [vmem:[%s5129_s3 + $0xda8] sm:$0xff]  ;;  %v1113_v6 = vld [vmem:[%s5129_s3 + $0xdb8] sm:$0xff] }
 0x258   :  { %2981 = vmatpush3.bf16.msra.mxu1 %v2980_v28  ;;  %v1046_v28 = vld [vmem:[%s5129_s3 + $0xba0] sm:$0xff] }
 0x259   :  { %2953 = vmatpush3.bf16.msra.mxu0 %v2952_v29  ;;  %2983 = vmatprep.subr.bf16.mxu1 %v2982_v19  ;;  %v1047_v29 = vld [vmem:[%s5129_s3 + $0xba8] sm:$0xff]  ;;  %v1016_v19 = vld [vmem:[%s5129_s3 + $0xab0] sm:$0xff]  ;;  %v1110_v59 = vld [vmem:[%s5129_s3 + $0xda0] sm:$0xff] }
 0x25a   :  { %2955 = vmatprep.subr.bf16.mxu0 %v2954_v37  ;;  %v3034_v37 = vpack.c.bf16 %v1047_v29, %v1046_v28  ;;  %v3006_v35 = vpack.c.bf16 %v1017_v2, %v1016_v19  ;;  %v1009_v29 = vld [vmem:[%s5129_s3 + $0xa78] sm:$0xff]  ;;  %v1056_v19 = vld [vmem:[%s5129_s3 + $0xbf0] sm:$0xff] }
 0x25b   :  { %v1057_v2 = vld [vmem:[%s5129_s3 + $0xbf8] sm:$0xff] }
 0x25c   :  { %2985 = vmatpush3.bf16.msra.mxu1 %v2984_v40  ;;  %v1018_v40 = vld [vmem:[%s5129_s3 + $0xac0] sm:$0xff] }
 0x25d   :  { %2957 = vmatpush3.bf16.msra.mxu0 %v2956_v10  ;;  %2987 = vmatprep.subr.bf16.mxu1 %v2986_v8  ;;  %v1019_v10 = vld [vmem:[%s5129_s3 + $0xac8] sm:$0xff] }
 0x25e   :  { %2959 = vmatprep.subr.bf16.mxu0 %v2958_v53  ;;  %v1033_v53 = vld [vmem:[%s5129_s3 + $0xb38] sm:$0xff]  ;;  %v3010_v34 = vpack.c.bf16 %v1019_v10, %v1018_v40  ;;  %v1106_v40 = vld [vmem:[%s5129_s3 + $0xd80] sm:$0xff]  ;;  %v1107_v10 = vld [vmem:[%s5129_s3 + $0xd88] sm:$0xff] }
 0x25f   :  { %v3090_v25 = vpack.c.bf16 %v1107_v10, %v1106_v40  ;;  %v1086_v40 = vld [vmem:[%s5129_s3 + $0xce0] sm:$0xff]  ;;  %v1087_v10 = vld [vmem:[%s5129_s3 + $0xce8] sm:$0xff] }
 0x260   :  { %2989 = vmatpush3.bf16.msra.mxu1 %v2988_v52  ;;  %v1020_v52 = vld [vmem:[%s5129_s3 + $0xad0] sm:$0xff] }
 0x261   :  { %2961 = vmatpush3.bf16.msra.mxu0 %v2960_v26  ;;  %2991 = vmatprep.subr.bf16.mxu1 %v2990_v45  ;;  %v1021_v26 = vld [vmem:[%s5129_s3 + $0xad8] sm:$0xff]  ;;  %v3040_v45 = vpack.c.bf16 %v1033_v53, %v1032_v7  ;;  %v3060_v7 = vpack.c.bf16 %v1059_v43, %v1058_v38  ;;  %v1090_v53 = vld [vmem:[%s5129_s3 + $0xd00] sm:$0xff]  ;;  %v1116_v38 = vld [vmem:[%s5129_s3 + $0xdd0] sm:$0xff] }
 0x262   :  { %2995 = vmatprep.subr.bf16.mxu0 %v2994_v50  ;;  %v1034_v50 = vld [vmem:[%s5129_s3 + $0xb40] sm:$0xff]  ;;  %v3014_v58 = vpack.c.bf16 %v1021_v26, %v1020_v52  ;;  %v1108_v52 = vld [vmem:[%s5129_s3 + $0xd90] sm:$0xff]  ;;  %v1109_v26 = vld [vmem:[%s5129_s3 + $0xd98] sm:$0xff] }
 0x263   :  { %v3044_v61 = vpack.c.bf16 %v1035_v55, %v1034_v50  ;;  %v3094_v55 = vpack.c.bf16 %v1109_v26, %v1108_v52  ;;  %v1117_v43 = vld [vmem:[%s5129_s3 + $0xdd8] sm:$0xff]  ;;  %v1088_v52 = vld [vmem:[%s5129_s3 + $0xcf0] sm:$0xff] }
 0x264   :  { %2993 = vmatpush3.bf16.msra.mxu1 %v2992_v23  ;;  %1754 = vmatmul.mubr.f32.vlgmr.msra.gmra.mrb[16].mxu0 %v4009_v36  ;;  %v3002_v36 = vpack.c.bf16 %v1015_v4, %v1014_v9  ;;  %v1022_v23 = vld [vmem:[%s5129_s3 + $0xae0] sm:$0xff]  ;;  %v1055_v4 = vld [vmem:[%s5129_s3 + $0xbe8] sm:$0xff]  ;;  %v1089_v26 = vld [vmem:[%s5129_s3 + $0xcf8] sm:$0xff] }
 0x265   :  { %2997 = vmatpush3.bf16.msra.mxu0 %v2996_v51  ;;  %1893 = vmatprep.mubr.f32.mxu0 %v4054_v60  ;;  %v999_v60 = vld [vmem:[%s5129_s3 + $0xa28] sm:$0xff]  ;;  %v1054_v9 = vld [vmem:[%s5129_s3 + $0xbe0] sm:$0xff] }
 0x266   :  { %3027 = vmatprep.subr.bf16.mxu1 %v3026_v11  ;;  %2999 = vmatprep.subr.bf16.mxu0 %v2998_v27  ;;  %v3004_v31 = vpack.c.bf16 %v999_v60, %v998_v33  ;;  %v1023_v51 = vld [vmem:[%s5129_s3 + $0xae8] sm:$0xff]  ;;  %v1036_v11 = vld [vmem:[%s5129_s3 + $0xb50] sm:$0xff]  ;;  %v1037_v27 = vld [vmem:[%s5129_s3 + $0xb58] sm:$0xff]  ;;  %v3050_v24 = vpack.c.bf16 %v1055_v4, %v1054_v9 }
 0x267   :  { %1824 = vmatmul.mubr.f32.vlgmr.msra.gmra.mrb[16].mxu1 %v4058_v54  ;;  %v1030_v54 = vld [vmem:[%s5129_s3 + $0xb20] sm:$0xff]  ;;  %v3018_v63 = vpack.c.bf16 %v1023_v51, %v1022_v23  ;;  %v1008_v60 = vld [vmem:[%s5129_s3 + $0xa70] sm:$0xff]  ;;  %v1081_v51 = vld [vmem:[%s5129_s3 + $0xcb8] sm:$0xff] }
 0x268   :  { %3029 = vmatpush3.bf16.msra.mxu1 %v3028_v14  ;;  %1963 = vmatprep.mubr.f32.mxu1 %v4073_v30  ;;  %v1001_v30 = vld [vmem:[%s5129_s3 + $0xa38] sm:$0xff]  ;;  %v3036_v8 = vpack.c.bf16 %v1031_v41, %v1030_v54  ;;  %v1024_v14 = vld [vmem:[%s5129_s3 + $0xaf0] sm:$0xff]  ;;  %v1038_v33 = vld [vmem:[%s5129_s3 + $0xb60] sm:$0xff]  ;;  %v3024_v54 = vpack.c.bf16 %v1009_v29, %v1008_v60  ;;  %v3054_v41 = vpack.c.bf16 %v1057_v2, %v1056_v19 }
 0x269   :  { %3001 = vmatpush3.bf16.msra.mxu0 %v3000_v0  ;;  %3031 = vmatprep.subr.bf16.mxu1 %v3030_v22  ;;  %v3008_v44 = vpack.c.bf16 %v1001_v30, %v1000_v32  ;;  %v1025_v0 = vld [vmem:[%s5129_s3 + $0xaf8] sm:$0xff]  ;;  %v3048_v22 = vpack.c.bf16 %v1037_v27, %v1036_v11  ;;  %v1040_v32 = vld [vmem:[%s5129_s3 + $0xb70] sm:$0xff]  ;;  %v1095_v11 = vld [vmem:[%s5129_s3 + $0xd28] sm:$0xff] }
 0x26a   :  { %3003 = vmatprep.subr.bf16.mxu0 %v3002_v36  ;;  %v1039_v36 = vld [vmem:[%s5129_s3 + $0xb68] sm:$0xff]  ;;  %v3022_v28 = vpack.c.bf16 %v1025_v0, %v1024_v14  ;;  %v1080_v23 = vld [vmem:[%s5129_s3 + $0xcb0] sm:$0xff]  ;;  %v1082_v9 = vld [vmem:[%s5129_s3 + $0xcc0] sm:$0xff] }
 0x26b   :  { %v1064_v27 = vld [vmem:[%s5129_s3 + $0xc30] sm:$0xff]  ;;  %v3070_v3 = vpack.c.bf16 %v1081_v51, %v1080_v23  ;;  %v1083_v4 = vld [vmem:[%s5129_s3 + $0xcc8] sm:$0xff]  ;;  %v1085_v2 = vld [vmem:[%s5129_s3 + $0xcd8] sm:$0xff] }
 0x26c   :  { %3033 = vmatpush3.bf16.msra.mxu1 %v3032_v16  ;;  %v1074_v16 = vld [vmem:[%s5129_s3 + $0xc80] sm:$0xff]  ;;  %v1067_v60 = vld [vmem:[%s5129_s3 + $0xc48] sm:$0xff]  ;;  %v1084_v19 = vld [vmem:[%s5129_s3 + $0xcd0] sm:$0xff] }
 0x26d   :  { %3005 = vmatpush3.bf16.msra.mxu0 %v3004_v31  ;;  %3035 = vmatprep.subr.bf16.mxu1 %v3034_v37  ;;  %v1075_v31 = vld [vmem:[%s5129_s3 + $0xc88] sm:$0xff]  ;;  %v3052_v37 = vpack.c.bf16 %v1039_v36, %v1038_v33  ;;  %v1066_v33 = vld [vmem:[%s5129_s3 + $0xc40] sm:$0xff]  ;;  %v3074_v36 = vpack.c.bf16 %v1083_v4, %v1082_v9  ;;  %v1104_v51 = vld [vmem:[%s5129_s3 + $0xd70] sm:$0xff] }
 0x26e   :  { %3007 = vmatprep.subr.bf16.mxu0 %v3006_v35  ;;  %v1041_v35 = vld [vmem:[%s5129_s3 + $0xb78] sm:$0xff]  ;;  %v3058_v30 = vpack.c.bf16 %v1075_v31, %v1074_v16  ;;  %v1115_v29 = vld [vmem:[%s5129_s3 + $0xdc8] sm:$0xff]  ;;  %v3076_v31 = vpack.c.bf16 %v1067_v60, %v1066_v33 }
 0x270   :  { %3037 = vmatpush3.bf16.msra.mxu1 %v3036_v8  ;;  %v1076_v8 = vld [vmem:[%s5129_s3 + $0xc90] sm:$0xff] }
 0x271   :  { %3009 = vmatpush3.bf16.msra.mxu0 %v3008_v44  ;;  %3039 = vmatprep.subr.bf16.mxu1 %v3038_v46  ;;  %v1077_v44 = vld [vmem:[%s5129_s3 + $0xc98] sm:$0xff]  ;;  %v3056_v46 = vpack.c.bf16 %v1041_v35, %v1040_v32  ;;  %v1068_v32 = vld [vmem:[%s5129_s3 + $0xc50] sm:$0xff]  ;;  %v3078_v35 = vpack.c.bf16 %v1085_v2, %v1084_v19 }
 0x272   :  { %3011 = vmatprep.subr.bf16.mxu0 %v3010_v34  ;;  %v1060_v34 = vld [vmem:[%s5129_s3 + $0xc10] sm:$0xff]  ;;  %v3062_v12 = vpack.c.bf16 %v1077_v44, %v1076_v8 }
 0x273   :  { %v3064_v50 = vpack.c.bf16 %v1061_v42, %v1060_v34  ;;  %v3082_v34 = vpack.c.bf16 %v1087_v10, %v1086_v40  ;;  %v1119_v42 = vld [vmem:[%s5129_s3 + $0xde8] sm:$0xff] }
 0x274   :  { %3041 = vmatpush3.bf16.msra.mxu1 %v3040_v45  ;;  %v1078_v45 = vld [vmem:[%s5129_s3 + $0xca0] sm:$0xff] }
 0x275   :  { %3013 = vmatpush3.bf16.msra.mxu0 %v3012_v49  ;;  %3043 = vmatprep.subr.bf16.mxu1 %v3042_v47  ;;  %v1079_v49 = vld [vmem:[%s5129_s3 + $0xca8] sm:$0xff]  ;;  %v3092_v47 = vpack.c.bf16 %v1091_v57, %v1090_v53  ;;  %v1101_v53 = vld [vmem:[%s5129_s3 + $0xd58] sm:$0xff]  ;;  %v1070_v57 = vld [vmem:[%s5129_s3 + $0xc60] sm:$0xff] }
 0x276   :  { %3015 = vmatprep.subr.bf16.mxu0 %v3014_v58  ;;  %v1093_v58 = vld [vmem:[%s5129_s3 + $0xd18] sm:$0xff] }
 0x278   :  { %3045 = vmatpush3.bf16.msra.mxu1 %v3044_v61  ;;  %v3096_v61 = vpack.c.bf16 %v1093_v58, %v1092_v56  ;;  %v1072_v56 = vld [vmem:[%s5129_s3 + $0xc70] sm:$0xff]  ;;  %v3086_v58 = vpack.c.bf16 %v1089_v26, %v1088_v52 }
 0x279   :  { %3017 = vmatpush3.bf16.msra.mxu0 %v3016_v17  ;;  %3047 = vmatprep.subr.bf16.mxu1 %v3046_v62  ;;  %v3098_v62 = vpack.c.bf16 %v1111_v15, %v1110_v59 }
 0x27a   :  { %3019 = vmatprep.subr.bf16.mxu0 %v3018_v63  ;;  %v1112_v63 = vld [vmem:[%s5129_s3 + $0xdb0] sm:$0xff] }
 0x27c   :  { %3049 = vmatpush3.bf16.msra.mxu1 %v3048_v22  ;;  %v3102_v22 = vpack.c.bf16 %v1113_v6, %v1112_v63 }
 0x27d   :  { %3021 = vmatpush3.bf16.msra.mxu0 %v3020_v39  ;;  %3051 = vmatprep.subr.bf16.mxu1 %v3050_v24  ;;  %v1096_v39 = vld [vmem:[%s5129_s3 + $0xd30] sm:$0xff]  ;;  %v1097_v24 = vld [vmem:[%s5129_s3 + $0xd38] sm:$0xff] }
 0x27e   :  { %3023 = vmatprep.subr.bf16.mxu0 %v3022_v28  ;;  %v1114_v28 = vld [vmem:[%s5129_s3 + $0xdc0] sm:$0xff]  ;;  %v3104_v16 = vpack.c.bf16 %v1097_v24, %v1096_v39 }
 0x280   :  { %3053 = vmatpush3.bf16.msra.mxu1 %v3052_v37  ;;  %v3106_v37 = vpack.c.bf16 %v1115_v29, %v1114_v28 }
 0x281   :  { %3025 = vmatpush3.bf16.msra.mxu0 %v3024_v54  ;;  %3055 = vmatprep.subr.bf16.mxu1 %v3054_v41  ;;  %v1098_v54 = vld [vmem:[%s5129_s3 + $0xd40] sm:$0xff]  ;;  %v1099_v41 = vld [vmem:[%s5129_s3 + $0xd48] sm:$0xff] }
 0x282   :  { %3059 = vmatprep.subr.bf16.mxu0 %v3058_v30  ;;  %v1069_v30 = vld [vmem:[%s5129_s3 + $0xc58] sm:$0xff]  ;;  %v3108_v8 = vpack.c.bf16 %v1099_v41, %v1098_v54 }
 0x283   :  { %v3080_v44 = vpack.c.bf16 %v1069_v30, %v1068_v32 }
 0x284   :  { %3057 = vmatpush3.bf16.msra.mxu1 %v3056_v46  ;;  %1894 = vmatmul.mubr.f32.vlgmr.msra.gmra.mrb[18].mxu0 %v4114_v13  ;;  %v3066_v13 = vpack.c.bf16 %v1079_v49, %v1078_v45  ;;  %v3110_v46 = vpack.c.bf16 %v1117_v43, %v1116_v38 }
 0x285   :  { %3061 = vmatpush3.bf16.msra.mxu0 %v3060_v7  ;;  %2033 = vmatprep.mubr.f32.mxu0 %v4125_v18  ;;  %v1063_v18 = vld [vmem:[%s5129_s3 + $0xc28] sm:$0xff]  ;;  %v1100_v7 = vld [vmem:[%s5129_s3 + $0xd50] sm:$0xff] }
 0x286   :  { %3091 = vmatprep.subr.bf16.mxu1 %v3090_v25  ;;  %3063 = vmatprep.subr.bf16.mxu0 %v3062_v12  ;;  %v3068_v17 = vpack.c.bf16 %v1063_v18, %v1062_v5  ;;  %v1071_v25 = vld [vmem:[%s5129_s3 + $0xc68] sm:$0xff]  ;;  %v1118_v12 = vld [vmem:[%s5129_s3 + $0xde0] sm:$0xff]  ;;  %v3112_v45 = vpack.c.bf16 %v1101_v53, %v1100_v7  ;;  %v1073_v5 = vld [vmem:[%s5129_s3 + $0xc78] sm:$0xff] }
 0x287   :  { %1964 = vmatmul.mubr.f32.vlgmr.msra.gmra.mrb[18].mxu1 %v4131_v20  ;;  %v1094_v20 = vld [vmem:[%s5129_s3 + $0xd20] sm:$0xff]  ;;  %v3084_v49 = vpack.c.bf16 %v1071_v25, %v1070_v57  ;;  %v1121_v18 = vld [vmem:[%s5129_s3 + $0xdf8] sm:$0xff]  ;;  %v3088_v15 = vpack.c.bf16 %v1073_v5, %v1072_v56 }
 0x288   :  { %3093 = vmatpush3.bf16.msra.mxu1 %v3092_v47  ;;  %2103 = vmatprep.mubr.f32.mxu1 %v4146_v48  ;;  %v1065_v48 = vld [vmem:[%s5129_s3 + $0xc38] sm:$0xff]  ;;  %v3100_v14 = vpack.c.bf16 %v1095_v11, %v1094_v20  ;;  %v3114_v47 = vpack.c.bf16 %v1119_v42, %v1118_v12  ;;  %v2159_v20 = vld [vmem:[%s5130_s4] ss:$0 sm:$0xff] }
 0x289   :  { %3065 = vmatpush3.bf16.msra.mxu0 %v3064_v50  ;;  %3095 = vmatprep.subr.bf16.mxu1 %v3094_v55  ;;  %v3072_v0 = vpack.c.bf16 %v1065_v48, %v1064_v27  ;;  %v1102_v50 = vld [vmem:[%s5129_s3 + $0xd60] sm:$0xff]  ;;  %v1103_v55 = vld [vmem:[%s5129_s3 + $0xd68] sm:$0xff] }
 0x28a   :  { %3067 = vmatprep.subr.bf16.mxu0 %v3066_v13  ;;  %v1120_v13 = vld [vmem:[%s5129_s3 + $0xdf0] sm:$0xff]  ;;  %v3116_v59 = vpack.c.bf16 %v1103_v55, %v1102_v50 }
 0x28b   :  { %v3118_v23 = vpack.c.bf16 %v1121_v18, %v1120_v13 }
 0x28c   :  { %3097 = vmatpush3.bf16.msra.mxu1 %v3096_v61  ;;  %v1105_v61 = vld [vmem:[%s5129_s3 + $0xd78] sm:$0xff]  ;;  %s3195_s3 = smov [#allocation2]  }
 0x28d   :  { %3069 = vmatpush3.bf16.msra.mxu0 %v3068_v17  ;;  %3099 = vmatprep.subr.bf16.mxu1 %v3098_v62  ;;  %v3120_v17 = vpack.c.bf16 %v1105_v61, %v1104_v51  ;;  %s2117_s4 = sshll.u32 %s3195_s3, 4  ;;  %s2118_s4 = int_to_ptr.vmem [resolvable:$true] %s2117_s4 }
 0x28e   :  { %3071 = vmatprep.subr.bf16.mxu0 %v3070_v3  ;;  %s3167_s25 = scalar_lea.vmem %s2118_s4, 32  ;;  %p3172_p1 = scmp.lt.s32.totalorder %s2118_s4, %s2118_s4 }
 0x28f   :  { %p3168_p0 = scmp.ne.s32.totalorder %s2118_s4, %s3167_s25  ;;  %p3173_p2 = scmp.lt.s32.totalorder %s3167_s25, %s3167_s25 }
 0x290   :  { %3101 = vmatpush3.bf16.msra.mxu1 %v3100_v14 }
 0x291   :  { %3073 = vmatpush3.bf16.msra.mxu0 %v3072_v0  ;;  %3103 = vmatprep.subr.bf16.mxu1 %v3102_v22  ;;  %p3174_p3 = por %p3173_p2, %p3172_p1 }
 0x292   :  { %3075 = vmatprep.subr.bf16.mxu0 %v3074_v36 }
 0x293   :  { %p3175_p4 = pnand %p3174_p3, %p3168_p0 }
 0x294   :  { %3105 = vmatpush3.bf16.msra.mxu1 %v3104_v16 }
 0x295   :  { %3077 = vmatpush3.bf16.msra.mxu0 %v3076_v31  ;;  %3107 = vmatprep.subr.bf16.mxu1 %v3106_v37 }
 0x296   :  { %3079 = vmatprep.subr.bf16.mxu0 %v3078_v35 }
 0x298   :  { %3109 = vmatpush3.bf16.msra.mxu1 %v3108_v8 }
 0x299   :  { %3081 = vmatpush3.bf16.msra.mxu0 %v3080_v44  ;;  %3111 = vmatprep.subr.bf16.mxu1 %v3110_v46 }
 0x29a   :  { %3083 = vmatprep.subr.bf16.mxu0 %v3082_v34 }
 0x29c   :  { %3113 = vmatpush3.bf16.msra.mxu1 %v3112_v45 }
 0x29d   :  { %3085 = vmatpush3.bf16.msra.mxu0 %v3084_v49  ;;  %3115 = vmatprep.subr.bf16.mxu1 %v3114_v47 }
 0x29e   :  { %3087 = vmatprep.subr.bf16.mxu0 %v3086_v58 }
 0x2a0   :  { %3117 = vmatpush3.bf16.msra.mxu1 %v3116_v59 }
 0x2a1   :  { %3089 = vmatpush3.bf16.msra.mxu0 %v3088_v15  ;;  %3119 = vmatprep.subr.bf16.mxu1 %v3118_v23 }
 0x2a4   :  { %3121 = vmatpush3.bf16.msra.mxu1 %v3120_v17  ;;  %2034 = vmatmul.mubr.f32.vlgmr.msra.gmra.mrb[20].mxu0 %v4161_v1 }
 0x2a7   :  { %2104 = vmatmul.mubr.f32.vlgmr.msra.gmra.mrb[20].mxu1 %v4172_v21 }
 0x2b7   :  { %v2192_v62 = vpop.f32.mrb[8].mxu0 }
 0x2b8   :  { %v2193_v11 = vpop.f32.mrb[9].mxu0 }
 0x2b9   :  { %v2194_v27 = vadd.f32 %v2193_v11, %v2192_v62 }
 0x2ba   :  { %v2227_v48 = vpop.f32.mrb[8].mxu1 }
 0x2bb   :  { %v1196_v3 = vadd.f32 %v2194_v27, %v2159_v20  ;;  %v2228_v63 = vpop.f32.mrb[9].mxu1 }
 0x2bc   :  { %v2229_v6 = vadd.f32 %v2228_v63, %v2227_v48 }
 0x2be   :  { %v1266_v9 = vadd.f32 %v2229_v6, %v1196_v3 }
 0x2d7   :  { %v2262_v4 = vpop.f32.mrb[10].mxu0 }
 0x2d8   :  { %v2263_v14 = vpop.f32.mrb[11].mxu0 }
 0x2d9   :  { %v2264_v0 = vadd.f32 %v2263_v14, %v2262_v4 }
 0x2da   :  { %v2297_v22 = vpop.f32.mrb[10].mxu1 }
 0x2db   :  { %v1336_v39 = vadd.f32 %v2264_v0, %v1266_v9  ;;  %v2298_v1 = vpop.f32.mrb[11].mxu1 }
 0x2dc   :  { %v2299_v24 = vadd.f32 %v2298_v1, %v2297_v22 }
 0x2de   :  { %v1406_v21 = vadd.f32 %v2299_v24, %v1336_v39 }
 0x2f7   :  { %v2332_v33 = vpop.f32.mrb[12].mxu0 }
 0x2f8   :  { %v2333_v36 = vpop.f32.mrb[13].mxu0 }
 0x2f9   :  { %v2334_v60 = vadd.f32 %v2333_v36, %v2332_v33 }
 0x2fa   :  { %v2367_v28 = vpop.f32.mrb[12].mxu1 }
 0x2fb   :  { %v1476_v29 = vadd.f32 %v2334_v60, %v1406_v21  ;;  %v2368_v19 = vpop.f32.mrb[13].mxu1 }
 0x2fc   :  { %v2369_v2 = vadd.f32 %v2368_v19, %v2367_v28 }
 0x2fe   :  { %v1546_v16 = vadd.f32 %v2369_v2, %v1476_v29 }
 0x317   :  { %v2402_v31 = vpop.f32.mrb[14].mxu0 }
 0x318   :  { %v2403_v37 = vpop.f32.mrb[15].mxu0 }
 0x319   :  { %v2404_v54 = vadd.f32 %v2403_v37, %v2402_v31 }
 0x31a   :  { %v2437_v41 = vpop.f32.mrb[14].mxu1 }
 0x31b   :  { %v1616_v32 = vadd.f32 %v2404_v54, %v1546_v16  ;;  %v2438_v35 = vpop.f32.mrb[15].mxu1 }
 0x31c   :  { %v2439_v30 = vadd.f32 %v2438_v35, %v2437_v41 }
 0x31e   :  { %v1686_v38 = vadd.f32 %v2439_v30, %v1616_v32 }
 0x337   :  { %v2472_v43 = vpop.f32.mrb[16].mxu0 }
 0x338   :  { %v2473_v40 = vpop.f32.mrb[17].mxu0 }
 0x339   :  { %v2474_v10 = vadd.f32 %v2473_v40, %v2472_v43 }
 0x33a   :  { %v2507_v8 = vpop.f32.mrb[16].mxu1 }
 0x33b   :  { %v1756_v44 = vadd.f32 %v2474_v10, %v1686_v38  ;;  %v2508_v46 = vpop.f32.mrb[17].mxu1 }
 0x33c   :  { %v2509_v7 = vadd.f32 %v2508_v46, %v2507_v8 }
 0x33e   :  { %v1826_v53 = vadd.f32 %v2509_v7, %v1756_v44 }
 0x357   :  { %v2542_v57 = vpop.f32.mrb[18].mxu0 }
 0x358   :  { %v2543_v34 = vpop.f32.mrb[19].mxu0 }
 0x359   :  { %v2544_v25 = vadd.f32 %v2543_v34, %v2542_v57 }
 0x35a   :  { %v2577_v12 = vpop.f32.mrb[18].mxu1 }
 0x35b   :  { %v1896_v42 = vadd.f32 %v2544_v25, %v1826_v53  ;;  %v2578_v52 = vpop.f32.mrb[19].mxu1 }
 0x35c   :  { %v2579_v26 = vadd.f32 %v2578_v52, %v2577_v12 }
 0x35e   :  { %v1966_v45 = vadd.f32 %v2579_v26, %v1896_v42 }
 0x377   :  { %v2612_v49 = vpop.f32.mrb[20].mxu0 }
 0x378   :  { %v2613_v47 = vpop.f32.mrb[21].mxu0 }
 0x379   :  { %v2614_v50 = vadd.f32 %v2613_v47, %v2612_v49 }
 0x37a   :  { %v2647_v55 = vpop.f32.mrb[20].mxu1 }
 0x37b   :  { %v2036_v56 = vadd.f32 %v2614_v50, %v1966_v45  ;;  %v2648_v58 = vpop.f32.mrb[21].mxu1 }
 0x37c   :  { %v2649_v5 = vadd.f32 %v2648_v58, %v2647_v55 }
 0x37e   :  { %v2106_v13 = vadd.f32 %v2649_v5, %v2036_v56 }
 0x380   :  { %2110 = vst.msk [vmem:[#allocation2] sm:$0x3] %vm2109_vm7, %v2106_v13 }
 0x381   :  { %3178 = shalt.err (!%p3175_p4)
}
 0x382   :  { %s3179_s28 = scalar_lea.hbm %s5131_s5, 32 }
 0x383   :  { %p3180_p5 = scmp.ne.s32.totalorder %s5131_s5, %s3179_s28  ;;  %p3183_p6 = scmp.lt.u32.totalorder %s3179_s28, %s5131_s5 }
 0x385   :  { %p3185_p7 = pnand %p3183_p6, %p3180_p5 }
 0x387   :  { %3188 = shalt.err (!%p3185_p7)
}
 0x388   :  { %2120 = dma.vmem_to_hbm [thread:$0]  %s2118_s4, 32, %s5131_s5, [#allocation3]  }
 0x389   :  { %3189 = dma.done.wait [#allocation3], 32  }
 0x38a   :  { %3190 = vsyncadd [#allocation3], 4294967264 }
 0x38b   :  { %2124 = vsyncpa [#allocation3], 1 }

</bundles_post_ra>
